<compile_context>
chip_gen: v6e
topology: v6e:2x2x1
jax: 0.10.0
libtpu: 0.0.40
codegen_flags: <defaults>
</compile_context>

<pallas_src>
import functools

import jax
import jax.numpy as jnp
from jax import lax
from jax.experimental import pallas as pl
from jax.experimental.pallas import tpu as pltpu


# ---------------------------------------------------------------------------
# Kernel 1: fused Q / K / V projections (1x1 convs, BN folded), run ONCE.
# ---------------------------------------------------------------------------
def _proj_kernel(x_ref, w1_ref, b1_ref, wq2_ref, bq2_ref, wk2_ref, bk2_ref,
                 q_ref, kv_ref, *, ckp):
    """One (batch, row-tile) grid step: project x -> Q and [K|V] (bf16)."""
    x = x_ref[0]                                                  # (tp, Cin_p) bf16
    # Stage 1: x @ [Wq1 | Wk1 | Wv] -- one wide bf16 MXU matmul, f32 accum.
    h1 = jnp.dot(x, w1_ref[...],
                 preferred_element_type=jnp.float32) + b1_ref[...]
    q1 = h1[:, :ckp].astype(jnp.bfloat16)
    k1 = h1[:, ckp:2 * ckp].astype(jnp.bfloat16)
    v = h1[:, 2 * ckp:]
    # Stage 2: second conv+BN of the query/key paths (Ck^-0.5 folded into Wq2).
    q = jnp.dot(q1, wq2_ref[...],
                preferred_element_type=jnp.float32) + bq2_ref[...]
    k = jnp.dot(k1, wk2_ref[...],
                preferred_element_type=jnp.float32) + bk2_ref[...]
    q_ref[0] = q.astype(jnp.bfloat16)
    # Concatenated [K | V] output; both stores start at 128-aligned lanes.
    kv_ref[0, :, :ckp] = k.astype(jnp.bfloat16)
    kv_ref[0, :, ckp:] = v.astype(jnp.bfloat16)


# ---------------------------------------------------------------------------
# Kernel 2: flash-style attention + output 1x1 conv (BN folded).
# ---------------------------------------------------------------------------
def _attn_kernel(q_ref, kv_ref, ww_ref, bw_ref, out_ref,
                 m_scr, l_scr, acc_scr, *, ckp):
    """One (batch, q-tile, kv-tile) grid step of the OC attention block."""
    ki = pl.program_id(2)
    nk = pl.num_programs(2)

    @pl.when(ki == 0)
    def _init():
        m_scr[...] = jnp.full(m_scr.shape, -jnp.inf, m_scr.dtype)
        l_scr[...] = jnp.zeros(l_scr.shape, l_scr.dtype)
        acc_scr[...] = jnp.zeros(acc_scr.shape, acc_scr.dtype)

    q = q_ref[0]                                                  # (tq, Ckp) bf16
    kv = kv_ref[0]                                                # (tk, Ckp+Cvp) bf16
    k = kv[:, :ckp]
    v = kv[:, ckp:]

    # s = q @ k^T; Ck^-0.5 already folded into the query weights.  Contract
    # the last dims directly (no explicit transpose -> no XLU / VMEM copy).
    s = lax.dot_general(q, k, (((1,), (1,)), ((), ())),
                        preferred_element_type=jnp.float32)       # (tq, tk) f32

    # Online softmax (f32 math on VPU/EUP; v5e has no bf16 VPU/EUP path).
    m_prev = m_scr[...]
    m_new = jnp.maximum(m_prev, jnp.max(s, axis=-1, keepdims=True))
    alpha = jnp.exp(m_prev - m_new)
    p = jnp.exp(s - m_new)
    l_scr[...] = alpha * l_scr[...] + jnp.sum(p, axis=-1, keepdims=True)
    acc_scr[...] = alpha * acc_scr[...] + jnp.dot(
        p.astype(jnp.bfloat16), v, preferred_element_type=jnp.float32)
    m_scr[...] = m_new

    @pl.when(ki == nk - 1)
    def _finish():
        # Exact normalization divide (runs once per q-tile -> essentially free,
        # tighter than pl.reciprocal(approx=True)).
        ctx = acc_scr[...] / l_scr[...]
        out = jnp.dot(ctx.astype(jnp.bfloat16), ww_ref[...],
                      preferred_element_type=jnp.float32) + bw_ref[...]
        out_ref[0] = out.astype(out_ref.dtype)


# ---------------------------------------------------------------------------
# Wrapper: BN folding, weight packing/padding, the two pallas_calls.
# ---------------------------------------------------------------------------
def _round_up(n, m):
    return ((n + m - 1) // m) * m


def _pick_tile(hw):
    for t in (512, 256, 128):
        if hw % t == 0:
            return t
    return hw


def _fold_conv_bn(w, b, bn=None, extra_scale=1.0, eps=1e-5):
    """Fold an inference BatchNorm (and an optional scalar) into a 1x1 conv."""
    w = w.astype(jnp.float32)
    b = b.astype(jnp.float32)
    if bn is not None:
        gamma, beta, mean, var = bn
        scale = gamma / jnp.sqrt(var + eps)
        shift = beta - mean * scale
        w = w * scale[:, None]
        b = b * scale + shift
    return w * extra_scale, b * extra_scale


def _pack_w(w, b, cin_p, cout_p):
    """(Cout, Cin) weight -> transposed, zero-padded (cin_p, cout_p) bf16;
    bias -> (1, cout_p) f32 (added to the f32 accumulator)."""
    cout, cin = w.shape
    wt = jnp.zeros((cin_p, cout_p), jnp.float32).at[:cin, :cout].set(w.T)
    bp = jnp.zeros((1, cout_p), jnp.float32).at[0, :cout].set(b)
    return wt.astype(jnp.bfloat16), bp


def baseoc_context_forward(x_nchw, params, *, tq=None, tk=None):
    B, C, H, W = x_nchw.shape
    HW = H * W
    Ck = params['wq1'].shape[0]
    Cv = params['wv'].shape[0]
    Cout = params['ww'].shape[0]

    # Padded (lane-dense, 128-aligned) channel dims.  At production channel
    # counts (256/512) these pads are no-ops.
    Cin_p = _round_up(C, 128)
    Ckp = _round_up(Ck, 128)
    Cvp = _round_up(Cv, 128)
    Coutp = _round_up(Cout, 128)

    # Row tiles over the HW (sequence) axis: prefer 512 (amortizes per-step
    # overhead; ~85% of HBM roofline on v6e), fall back by divisibility.
    # Budget stays well under the 32 MiB default scoped VMEM on all chips
    # (incl. v7x's 64 MiB physical), so no vmem_limit_bytes override needed.
    if tq is None:
        tq = _pick_tile(HW)
    if tk is None:
        tk = _pick_tile(HW)
    tp = _pick_tile(HW)
    assert HW % tq == 0 and HW % tk == 0 and HW % tp == 0, \
        "row tiles must divide H*W"
    nq, nk, npx = HW // tq, HW // tk, HW // tp

    # ---- fold BatchNorms (and the Ck^-0.5 softmax scale) into the convs -----
    wq1f, bq1f = _fold_conv_bn(params['wq1'], params['bq1'], params['bnq1'])
    wq2f, bq2f = _fold_conv_bn(params['wq2'], params['bq2'], params['bnq2'],
                               extra_scale=float(Ck) ** -0.5)
    wk1f, bk1f = _fold_conv_bn(params['wk1'], params['bk1'], params['bnk1'])
    wk2f, bk2f = _fold_conv_bn(params['wk2'], params['bk2'], params['bnk2'])
    wvf, bvf = _fold_conv_bn(params['wv'], params['bv'], None)
    wwf, bwf = _fold_conv_bn(params['ww'], params['bw'], params['bno'])

    # ---- pack: transpose to (Cin, Cout), zero-pad to 128 lanes, bf16 --------
    Wq1, bq1 = _pack_w(wq1f, bq1f, Cin_p, Ckp)
    Wq2, bq2 = _pack_w(wq2f, bq2f, Ckp, Ckp)
    Wk1, bk1 = _pack_w(wk1f, bk1f, Cin_p, Ckp)
    Wk2, bk2 = _pack_w(wk2f, bk2f, Ckp, Ckp)
    Wv, bv = _pack_w(wvf, bvf, Cin_p, Cvp)
    Ww, bw = _pack_w(wwf, bwf, Cvp, Coutp)
    # Fuse the three stage-1 convs (query-1, key-1, value) into one wide matmul.
    W1 = jnp.concatenate([Wq1, Wk1, Wv], axis=1)      # (Cin_p, 2*Ckp + Cvp) bf16
    b1 = jnp.concatenate([bq1, bk1, bv], axis=1)      # (1, 2*Ckp + Cvp) f32

    # ---- NCHW -> (B, HW, Cin_p) bf16, zero-padded channels -------------------
    # TODO(synk): if the surrounding model can feed NHWC-bf16 directly, this
    # layout pass (and the mirror one on the output) can be dropped.
    x = jnp.transpose(x_nchw, (0, 2, 3, 1)).reshape(B, HW, C)
    x = jnp.pad(x, ((0, 0), (0, 0), (0, Cin_p - C))).astype(jnp.bfloat16)

    # ---- pallas_call 1: projections (x read once, projections done once) ----
    proj_weights = [W1, b1, Wq2, bq2, Wk2, bk2]
    proj_in_specs = [pl.BlockSpec((1, tp, Cin_p), lambda b, i: (b, i, 0))]
    # Constant-index weight blocks; shipped in bf16 to halve the
    # double-buffered VMEM footprint (per review).
    proj_in_specs += [pl.BlockSpec(w.shape, lambda b, i: (0, 0))
                      for w in proj_weights]
    proj_out_specs = [
        pl.BlockSpec((1, tp, Ckp), lambda b, i: (b, i, 0)),           # Q
        pl.BlockSpec((1, tp, Ckp + Cvp), lambda b, i: (b, i, 0)),     # [K|V]
    ]
    proj_cost = pl.CostEstimate(
        flops=int(2 * B * HW * (Cin_p * (2 * Ckp + Cvp) + 2 * Ckp * Ckp)),
        transcendentals=0,
        bytes_accessed=int(x.nbytes + B * HW * (2 * Ckp + Cvp) * 2
                           + sum(int(w.nbytes) for w in proj_weights)))
    q_proj, kv_proj = pl.pallas_call(
        functools.partial(_proj_kernel, ckp=Ckp),
        out_shape=(jax.ShapeDtypeStruct((B, HW, Ckp), jnp.bfloat16),
                   jax.ShapeDtypeStruct((B, HW, Ckp + Cvp), jnp.bfloat16)),
        grid=(B, npx),
        in_specs=proj_in_specs,
        out_specs=proj_out_specs,
        compiler_params=pltpu.CompilerParams(
            dimension_semantics=("parallel", "parallel")),
        cost_estimate=proj_cost,
    )(x, *proj_weights)

    # ---- pallas_call 2: flash attention + output conv ------------------------
    attn_in_specs = [
        pl.BlockSpec((1, tq, Ckp), lambda b, qi, ki: (b, qi, 0)),        # Q rows
        pl.BlockSpec((1, tk, Ckp + Cvp), lambda b, qi, ki: (b, ki, 0)),  # KV rows
        pl.BlockSpec(Ww.shape, lambda b, qi, ki: (0, 0)),
        pl.BlockSpec(bw.shape, lambda b, qi, ki: (0, 0)),
    ]
    attn_out_spec = pl.BlockSpec((1, tq, Coutp), lambda b, qi, ki: (b, qi, 0))
    scratch_shapes = [
        pltpu.VMEM((tq, 1), jnp.float32),      # running max
        pltpu.VMEM((tq, 1), jnp.float32),      # running denom
        pltpu.VMEM((tq, Cvp), jnp.float32),    # running context accumulator
    ]
    attn_cost = pl.CostEstimate(
        flops=int(2 * B * HW * HW * (Ckp + Cvp) + 2 * B * HW * Cvp * Coutp),
        transcendentals=int(B * HW * HW),
        bytes_accessed=int(q_proj.nbytes + kv_proj.nbytes * nq
                           + B * HW * Coutp * 4
                           + Ww.nbytes + bw.nbytes))
    out_p = pl.pallas_call(
        functools.partial(_attn_kernel, ckp=Ckp),
        out_shape=jax.ShapeDtypeStruct((B, HW, Coutp), jnp.float32),
        grid=(B, nq, nk),
        in_specs=attn_in_specs,
        out_specs=attn_out_spec,
        scratch_shapes=scratch_shapes,
        compiler_params=pltpu.CompilerParams(
            dimension_semantics=("parallel", "parallel", "arbitrary")),
        cost_estimate=attn_cost,
    )(q_proj, kv_proj, Ww, bw)

    # slice away the channel padding, back to NCHW
    out = out_p[:, :, :Cout].reshape(B, H, W, Cout)
    return jnp.transpose(out, (0, 3, 1, 2))


# ---------------------------------------------------------------------------
# Plain-JAX reference (full precision) of the PyTorch forward
# ---------------------------------------------------------------------------
def reference_forward(x_nchw, p):
    B, C, H, W = x_nchw.shape
    x = jnp.transpose(x_nchw, (0, 2, 3, 1)).reshape(B, H * W, C)
    conv = lambda h, w, b: jnp.einsum('bnc,oc->bno', h, w) + b

    def bn(h, prm, eps=1e-5):
        g, b, m, v = prm
        return (h - m) / jnp.sqrt(v + eps) * g + b

    q = bn(conv(x, p['wq1'], p['bq1']), p['bnq1'])
    q = bn(conv(q, p['wq2'], p['bq2']), p['bnq2'])
    k = bn(conv(x, p['wk1'], p['bk1']), p['bnk1'])
    k = bn(conv(k, p['wk2'], p['bk2']), p['bnk2'])
    v = conv(x, p['wv'], p['bv'])
    ck = p['wq1'].shape[0]
    sim = jnp.einsum('bnc,bmc->bnm', q, k) * (float(ck) ** -0.5)
    sim = jax.nn.softmax(sim, axis=-1)
    ctx = jnp.einsum('bnm,bmc->bnc', sim, v)
    out = bn(conv(ctx, p['ww'], p['bw']), p['bno'])
    return jnp.transpose(out.reshape(B, H, W, -1), (0, 3, 1, 2))


def init_params(key, cin, ck, cv, cout):
    keys = jax.random.split(key, 32)
    it = iter(keys)

    def w(shape, scale=0.2):
        return scale * jax.random.normal(next(it), shape, jnp.float32)

    def bnp(c):
        g = 1.0 + 0.1 * jax.random.normal(next(it), (c,), jnp.float32)
        b = 0.1 * jax.random.normal(next(it), (c,), jnp.float32)
        m = 0.1 * jax.random.normal(next(it), (c,), jnp.float32)
        v = jax.random.uniform(next(it), (c,), jnp.float32, minval=0.5, maxval=1.5)
        return (g, b, m, v)

    # NOTE: the PyTorch module zero-inits self.W (weight and bias), which would
    # make the whole output exactly zero; we use deterministic random weights
    # everywhere so the kernel is tested on a non-trivial computation.
    return dict(
        wq1=w((ck, cin)), bq1=w((ck,)), bnq1=bnp(ck),
        wq2=w((ck, ck)), bq2=w((ck,)), bnq2=bnp(ck),
        wk1=w((ck, cin)), bk1=w((ck,)), bnk1=bnp(ck),
        wk2=w((ck, ck)), bk2=w((ck,)), bnk2=bnp(ck),
        wv=w((cv, cin)), bv=w((cv,)),
        ww=w((cout, cv)), bw=w((cout,)),
        bno=bnp(cout),
    )


if __name__ == "__main__":
    # Small shapes consistent with the module: N x C x H x W input.
    B, Cin, H, W = 2, 4, 16, 16
    Ck, Cv, Cout = 4, 4, 4   # key_channels, value_channels, out_channels

    root = jax.random.PRNGKey(0)
    kx, kp = jax.random.split(root)
    x = jax.random.normal(kx, (B, Cin, H, W), jnp.float32)
    params = init_params(kp, Cin, Ck, Cv, Cout)

    out = jax.block_until_ready(baseoc_context_forward(x, params))
    ref = jax.block_until_ready(reference_forward(x, params))

    assert out.shape == (B, Cout, H, W)
    # bf16 MXU operands (f32 accumulation) -> looser tolerance than a pure-f32
    # kernel; softmax/exp math and the final normalization stay in f32.
    err = float(jnp.max(jnp.abs(out - ref)))
    assert jnp.allclose(out, ref, atol=2e-2, rtol=2e-2), \
        f"kernel does not match reference (max abs err = {err})"

    print("KERNEL_OK")
</pallas_src>

<mosaic_0001>
module attributes {stable_mosaic.version = 11 : i64} {
  func.func @_proj_kernel(%arg0: i32, %arg1: i32, %arg2: memref<1x256x128xbf16, #tpu.memory_space<vmem>>, %arg3: memref<128x384xbf16, #tpu.memory_space<vmem>>, %arg4: memref<1x384xf32, #tpu.memory_space<vmem>>, %arg5: memref<128x128xbf16, #tpu.memory_space<vmem>>, %arg6: memref<1x128xf32, #tpu.memory_space<vmem>>, %arg7: memref<128x128xbf16, #tpu.memory_space<vmem>>, %arg8: memref<1x128xf32, #tpu.memory_space<vmem>>, %arg9: memref<1x256x128xbf16, #tpu.memory_space<vmem>>, %arg10: memref<1x256x256xbf16, #tpu.memory_space<vmem>>) attributes {dimension_semantics = [#tpu.dimension_semantics<parallel>, #tpu.dimension_semantics<parallel>], iteration_bounds = array<i64: 2, 1>, scalar_prefetch = 0 : i64, scratch_operands = 0 : i64, tpu.core_type = #tpu.core_type<tc>, window_params = [{transform_indices = @transform_0, window_bounds = array<i64: 1, 256, 128>}, {pipeline_mode = #tpu.pipeline_mode<synchronous>, transform_indices = @transform_1, window_bounds = array<i64: 128, 384>}, {pipeline_mode = #tpu.pipeline_mode<synchronous>, transform_indices = @transform_2, window_bounds = array<i64: 1, 384>}, {pipeline_mode = #tpu.pipeline_mode<synchronous>, transform_indices = @transform_3, window_bounds = array<i64: 128, 128>}, {pipeline_mode = #tpu.pipeline_mode<synchronous>, transform_indices = @transform_4, window_bounds = array<i64: 1, 128>}, {pipeline_mode = #tpu.pipeline_mode<synchronous>, transform_indices = @transform_5, window_bounds = array<i64: 128, 128>}, {pipeline_mode = #tpu.pipeline_mode<synchronous>, transform_indices = @transform_6, window_bounds = array<i64: 1, 128>}, {transform_indices = @transform_7, window_bounds = array<i64: 1, 256, 128>}, {transform_indices = @transform_8, window_bounds = array<i64: 1, 256, 256>}]} {
    %c0 = arith.constant 0 : index
    %c0_0 = arith.constant 0 : index
    %c0_1 = arith.constant 0 : index
    %0 = vector.load %arg2[%c0, %c0_0, %c0_1] : memref<1x256x128xbf16, #tpu.memory_space<vmem>>, vector<1x256x128xbf16>
    %1 = vector.shape_cast %0 : vector<1x256x128xbf16> to vector<256x128xbf16>
    %c0_2 = arith.constant 0 : index
    %c0_3 = arith.constant 0 : index
    %2 = vector.load %arg3[%c0_2, %c0_3] : memref<128x384xbf16, #tpu.memory_space<vmem>>, vector<128x384xbf16>
    %cst = arith.constant dense<0.000000e+00> : vector<256x384xf32>
    %3 = tpu.matmul %1, %2, %cst {dimension_numbers = #tpu.dot_dimension_numbers<[1], [0], [0], [1], [0, 0, 1, 1], [], []>} : vector<256x128xbf16>, vector<128x384xbf16>, vector<256x384xf32> -> vector<256x384xf32>
    %c0_4 = arith.constant 0 : index
    %c0_5 = arith.constant 0 : index
    %4 = vector.load %arg4[%c0_4, %c0_5] : memref<1x384xf32, #tpu.memory_space<vmem>>, vector<1x384xf32>
    %5 = vector.broadcast %4 : vector<1x384xf32> to vector<256x384xf32>
    %6 = arith.addf %3, %5 : vector<256x384xf32>
    %7 = vector.extract_strided_slice %6 {offsets = [0, 0], sizes = [256, 128], strides = [1, 1]} : vector<256x384xf32> to vector<256x128xf32>
    %8 = arith.truncf %7 : vector<256x128xf32> to vector<256x128xbf16>
    %9 = vector.extract_strided_slice %6 {offsets = [0, 128], sizes = [256, 128], strides = [1, 1]} : vector<256x384xf32> to vector<256x128xf32>
    %10 = arith.truncf %9 : vector<256x128xf32> to vector<256x128xbf16>
    %11 = vector.extract_strided_slice %6 {offsets = [0, 256], sizes = [256, 128], strides = [1, 1]} : vector<256x384xf32> to vector<256x128xf32>
    %c0_6 = arith.constant 0 : index
    %c0_7 = arith.constant 0 : index
    %12 = vector.load %arg5[%c0_6, %c0_7] : memref<128x128xbf16, #tpu.memory_space<vmem>>, vector<128x128xbf16>
    %cst_8 = arith.constant dense<0.000000e+00> : vector<256x128xf32>
    %13 = tpu.matmul %8, %12, %cst_8 {dimension_numbers = #tpu.dot_dimension_numbers<[1], [0], [0], [1], [0, 0, 1, 1], [], []>} : vector<256x128xbf16>, vector<128x128xbf16>, vector<256x128xf32> -> vector<256x128xf32>
    %c0_9 = arith.constant 0 : index
    %c0_10 = arith.constant 0 : index
    %14 = vector.load %arg6[%c0_9, %c0_10] : memref<1x128xf32, #tpu.memory_space<vmem>>, vector<1x128xf32>
    %15 = vector.broadcast %14 : vector<1x128xf32> to vector<256x128xf32>
    %16 = arith.addf %13, %15 : vector<256x128xf32>
    %c0_11 = arith.constant 0 : index
    %c0_12 = arith.constant 0 : index
    %17 = vector.load %arg7[%c0_11, %c0_12] : memref<128x128xbf16, #tpu.memory_space<vmem>>, vector<128x128xbf16>
    %cst_13 = arith.constant dense<0.000000e+00> : vector<256x128xf32>
    %18 = tpu.matmul %10, %17, %cst_13 {dimension_numbers = #tpu.dot_dimension_numbers<[1], [0], [0], [1], [0, 0, 1, 1], [], []>} : vector<256x128xbf16>, vector<128x128xbf16>, vector<256x128xf32> -> vector<256x128xf32>
    %c0_14 = arith.constant 0 : index
    %c0_15 = arith.constant 0 : index
    %19 = vector.load %arg8[%c0_14, %c0_15] : memref<1x128xf32, #tpu.memory_space<vmem>>, vector<1x128xf32>
    %20 = vector.broadcast %19 : vector<1x128xf32> to vector<256x128xf32>
    %21 = arith.addf %18, %20 : vector<256x128xf32>
    %22 = arith.truncf %16 : vector<256x128xf32> to vector<256x128xbf16>
    %c0_16 = arith.constant 0 : index
    %c0_17 = arith.constant 0 : index
    %c0_18 = arith.constant 0 : index
    %23 = vector.load %arg9[%c0_16, %c0_17, %c0_18] : memref<1x256x128xbf16, #tpu.memory_space<vmem>>, vector<1x256x128xbf16>
    %24 = vector.shape_cast %23 : vector<1x256x128xbf16> to vector<256x128xbf16>
    %25 = vector.shape_cast %22 : vector<256x128xbf16> to vector<1x256x128xbf16>
    tpu.vector_store %arg9[%c0_16, %c0_17, %c0_18], %25 {strides = array<i32>} : memref<1x256x128xbf16, #tpu.memory_space<vmem>>, vector<1x256x128xbf16>,
    %26 = arith.truncf %21 : vector<256x128xf32> to vector<256x128xbf16>
    %c0_19 = arith.constant 0 : index
    %c0_20 = arith.constant 0 : index
    %c0_21 = arith.constant 0 : index
    %27 = vector.load %arg10[%c0_19, %c0_20, %c0_21] : memref<1x256x256xbf16, #tpu.memory_space<vmem>>, vector<1x256x128xbf16>
    %28 = vector.shape_cast %27 : vector<1x256x128xbf16> to vector<256x128xbf16>
    %29 = vector.shape_cast %26 : vector<256x128xbf16> to vector<1x256x128xbf16>
    tpu.vector_store %arg10[%c0_19, %c0_20, %c0_21], %29 {strides = array<i32>} : memref<1x256x256xbf16, #tpu.memory_space<vmem>>, vector<1x256x128xbf16>,
    %30 = arith.truncf %11 : vector<256x128xf32> to vector<256x128xbf16>
    %c0_22 = arith.constant 0 : index
    %c0_23 = arith.constant 0 : index
    %c128 = arith.constant 128 : index
    %31 = vector.load %arg10[%c0_22, %c0_23, %c128] : memref<1x256x256xbf16, #tpu.memory_space<vmem>>, vector<1x256x128xbf16>
    %32 = vector.shape_cast %31 : vector<1x256x128xbf16> to vector<256x128xbf16>
    %33 = vector.shape_cast %30 : vector<256x128xbf16> to vector<1x256x128xbf16>
    tpu.vector_store %arg10[%c0_22, %c0_23, %c128], %33 {strides = array<i32>} : memref<1x256x256xbf16, #tpu.memory_space<vmem>>, vector<1x256x128xbf16>,
    return
  }
  func.func @transform_0(%arg0: i32, %arg1: i32) -> (i32, i32, i32) {
    %c0_i32 = arith.constant 0 : i32
    %c0_i32_0 = arith.constant 0 : i32
    return %arg0, %arg1, %c0_i32 : i32, i32, i32
  }
  func.func @transform_1(%arg0: i32, %arg1: i32) -> (i32, i32) {
    %c0_i32 = arith.constant 0 : i32
    %c0_i32_0 = arith.constant 0 : i32
    %c0_i32_1 = arith.constant 0 : i32
    return %c0_i32, %c0_i32_0 : i32, i32
  }
  func.func @transform_2(%arg0: i32, %arg1: i32) -> (i32, i32) {
    %c0_i32 = arith.constant 0 : i32
    %c0_i32_0 = arith.constant 0 : i32
    %c0_i32_1 = arith.constant 0 : i32
    return %c0_i32, %c0_i32_0 : i32, i32
  }
  func.func @transform_3(%arg0: i32, %arg1: i32) -> (i32, i32) {
    %c0_i32 = arith.constant 0 : i32
    %c0_i32_0 = arith.constant 0 : i32
    %c0_i32_1 = arith.constant 0 : i32
    return %c0_i32, %c0_i32_0 : i32, i32
  }
  func.func @transform_4(%arg0: i32, %arg1: i32) -> (i32, i32) {
    %c0_i32 = arith.constant 0 : i32
    %c0_i32_0 = arith.constant 0 : i32
    %c0_i32_1 = arith.constant 0 : i32
    return %c0_i32, %c0_i32_0 : i32, i32
  }
  func.func @transform_5(%arg0: i32, %arg1: i32) -> (i32, i32) {
    %c0_i32 = arith.constant 0 : i32
    %c0_i32_0 = arith.constant 0 : i32
    %c0_i32_1 = arith.constant 0 : i32
    return %c0_i32, %c0_i32_0 : i32, i32
  }
  func.func @transform_6(%arg0: i32, %arg1: i32) -> (i32, i32) {
    %c0_i32 = arith.constant 0 : i32
    %c0_i32_0 = arith.constant 0 : i32
    %c0_i32_1 = arith.constant 0 : i32
    return %c0_i32, %c0_i32_0 : i32, i32
  }
  func.func @transform_7(%arg0: i32, %arg1: i32) -> (i32, i32, i32) {
    %c0_i32 = arith.constant 0 : i32
    %c0_i32_0 = arith.constant 0 : i32
    return %arg0, %arg1, %c0_i32 : i32, i32, i32
  }
  func.func @transform_8(%arg0: i32, %arg1: i32) -> (i32, i32, i32) {
    %c0_i32 = arith.constant 0 : i32
    %c0_i32_0 = arith.constant 0 : i32
    return %arg0, %arg1, %c0_i32 : i32, i32, i32
  }
}

</mosaic_0001>

<bundles_post_ra>
// kernel: tpu_custom_call.1
= control target key start
LH: loop header
LB: loop body
LE: loop exit
PB: predicated region body
PF: predicated region fallthrough
CT: control target
= control target key end

     0   :  { %s3937_s0 = inlined_call_operand.hbm [shape: bf16[2,256,128], index: 0, kind: input, shape index: {}]   ;;  %s3938_s1 = inlined_call_operand.hbm [shape: bf16[128,384], index: 1, kind: input, shape index: {}]   ;;  %s3939_s2 = inlined_call_operand.vmem [shape: f32[1,384], index: 2, kind: input, shape index: {}]   ;;  %s3940_s3 = inlined_call_operand.hbm [shape: bf16[128,128], index: 3, kind: input, shape index: {}]   ;;  %s3941_s4 = inlined_call_operand.vmem [shape: f32[1,128], index: 4, kind: input, shape index: {}]   ;;  %s3942_s5 = inlined_call_operand.hbm [shape: bf16[128,128], index: 5, kind: input, shape index: {}]   ;;  %s3943_s6 = inlined_call_operand.vmem [shape: f32[1,128], index: 6, kind: input, shape index: {}]   ;;  %s3944_s7 = inlined_call_operand.hbm [shape: bf16[2,256,128], index: 7, kind: output, shape index: {0}]   ;;  %s3945_s8 = inlined_call_operand.hbm [shape: bf16[2,256,256], index: 8, kind: output, shape index: {1}]  }
   0x1   :  { %3953 = sst [smem:[#allocation20_spill]] %s3938_s1 }
   0x2   :  { %3954 = sst [smem:[#allocation21_spill]] %s3940_s3 }
   0x3   :  { %3955 = sst [smem:[#allocation22_spill]] %s3942_s5 }
   0x4   :  { %14 = vsyncpa [#allocation3], 0 }
   0x5   :  { %16 = vsyncpa [#allocation3 + $0x1], 0 }
   0x6   :  { %17 = vsyncpa [#allocation6], 0 }
   0x7   :  { %18 = vsyncpa [#allocation9], 0 }
   0x8   :  { %19 = vsyncpa [#allocation4], 0 }
   0x9   :  { %21 = vsyncpa [#allocation4 + $0x1], 0 }
   0xa   :  { %22 = vsyncpa [#allocation12], 0 }
   0xb   :  { %24 = vsyncpa [#allocation12 + $0x1], 0  ;;  %s3291_s27 = smov 0   ;;  %s3293_s28 = smov 0  }
   0xc   :  { %s3295_s29 = smov 0   ;;  %s3297_s30 = smov 0  }
   0xd   :  { %s3299_s9 = smov 0   ;;  %s3301_s10 = smov 0  }
   0xe LB: > { %3956 = sst [smem:[#allocation18_spill]] %s3225_s9  ;;  %s2229_s11 = sadd.s32 4294967295, %s3229_s10   ;;  %s3229_s10 = sphi %s3301_s10, %s30_s10   ;;  %s3225_s9 = sphi %s3299_s9, %s3977_s9   ;;  %s3221_s30 = sphi %s3297_s30, %s3976_s30   ;;  %s3217_s29 = sphi %s3295_s29, %s3980_s29   ;;  %s3213_s28 = sphi %s3293_s28, %s3979_s28   ;;  %s3209_s27 = sphi %s3291_s27, %s3978_s27  }
   0xf   : > { %s2230_s12 = sadd.s32 4294967294, %s3229_s10   ;;  %p64_p0 = scmp.ne.s32.totalorder %s3213_s28, %s3209_s27 }
  0x10   : > { %p3325_p1 = scmp.eq.s32.totalorder %s2229_s11, 0  ;;  %p3329_p2 = scmp.eq.s32.totalorder %s2229_s11, 1 }
  0x11   : > { %p222_p3 = scmp.eq.s32.totalorder %s2230_s12, 1  ;;  %p2231_p5 = scmp.ge.s32.totalorder %s3229_s10, 1 }
  0x12   : > { %s3957_s13 = scalar_select %p3325_p1, 1, 0 }
  0x13   : > { %p3335_p4 = por %p3325_p1, %p64_p0  ;;  %p3340_p6 = por %p222_p3, %p64_p0 }
  0x14   : > { %p257_p7 = scmp.lt.s32.totalorder %s3229_s10, 3  ;;  %s3231_s18 = smov [#allocation5]  }
  0x15   : > { %s3959_s15 = scalar_select %p3335_p4, 1, 0 }
  0x16   : > { %s3960_s16 = scalar_select %p3340_p6, 1, 0 }
  0x17   : > { %p3345_p8 = pnand %p2231_p5, %p257_p7  ;;  %s269_s19 = sshll.u32 %s3231_s18, 4  ;;  %s270_s19 = int_to_ptr.vmem [resolvable:$true] %s269_s19 }
  0x18   : > { %s3232_s21 = smov [#allocation7]   ;;  %s3016_s23 = scalar_lea.vmem %s270_s19, 3072 }
  0x19   : > { %p2852_p9 = pneg %p3345_p8  ;;  %s285_s22 = sshll.u32 %s3232_s21, 4  ;;  %s286_s22 = int_to_ptr.vmem [resolvable:$true] %s285_s22 }
  0x1a   : > { %p3017_p13 = scmp.ne.s32.totalorder %s270_s19, %s3016_s23  ;;  %p3024_p5 = scmp.lt.s32.totalorder %s270_s19, %s270_s19 }
  0x1b   : > { %p3354_p11 = pnand %p2852_p9, %p3325_p1  ;;  %p3025_p7 = scmp.lt.s32.totalorder %s3016_s23, %s3016_s23 }
  0x1d   : > { %p3007_p12 = pneg %p3354_p11  ;;  %p3026_p10 = por %p3025_p7, %p3024_p5 }
  0x1f   : > { %p3019_p0 = pnand %p3017_p13, %p3007_p12 }
  0x21   : > { %p3020_p3 = pneg %p3019_p0 }
  0x23   : > { %p3027_p9 = pnand %p3026_p10, %p3020_p3 }
  0x25   : > { %3030 = shalt.err (!%p3027_p9)
}
  0x26   : > { %s3233_s24 = smov 192   ;;  %s3234_s25 = smov 12  }
  0x27   : > { %s3963_s1 = sld [smem:[#allocation20_spill]]  ;;  %s3042_s12 = scalar_lea.vmem %s286_s22, 1024 }
  0x28   : > { %p3043_p6 = scmp.ne.s32.totalorder %s286_s22, %s3042_s12  ;;  %p3050_p1 = scmp.lt.s32.totalorder %s286_s22, %s286_s22 }
  0x29   : > { %p3051_p4 = scmp.lt.s32.totalorder %s3042_s12, %s3042_s12 }
  0x2a   : > { %p3045_p13 = pnand %p3043_p6, %p3007_p12 }
  0x2b   : > { %p3052_p5 = por %p3051_p4, %p3050_p1 }
  0x2c   : > { %p3046_p0 = pneg %p3045_p13 }
  0x2d   : > { %2855 = dma.hbm_to_vmem [thread:$0]  (!%p3354_p11), %s3963_s1, 3072, %s270_s19, [#allocation6], %s3233_s24, %s3233_s24, %s3234_s25  }
  0x2e   : > { %p3053_p10 = pnand %p3052_p5, %p3046_p0 }
  0x30   : > { %3056 = shalt.err (!%p3053_p10)
}
  0x31   : > { %s3949_s18 = smov 64   ;;  %s3950_s21 = smov 4  }
  0x32   : > { %s3964_s3 = sld [smem:[#allocation21_spill]]  ;;  %s3237_s24 = smov [#allocation8]  }
  0x33   : > { %s301_s25 = sshll.u32 %s3237_s24, 4  ;;  %s302_s25 = int_to_ptr.vmem [resolvable:$true] %s301_s25 }
  0x34   : > { %s3068_s26 = scalar_lea.vmem %s302_s25, 1024  ;;  %p3076_p3 = scmp.lt.s32.totalorder %s302_s25, %s302_s25 }
  0x35   : > { %p3069_p6 = scmp.ne.s32.totalorder %s302_s25, %s3068_s26  ;;  %p3077_p7 = scmp.lt.s32.totalorder %s3068_s26, %s3068_s26 }
  0x37   : > { %p3071_p1 = pnand %p3069_p6, %p3007_p12  ;;  %p3078_p9 = por %p3077_p7, %p3076_p3 }
  0x38   : > { %2858 = dma.hbm_to_vmem [thread:$0]  (!%p3354_p11), %s3964_s3, 1024, %s286_s22, [#allocation6], %s3949_s18, %s3949_s18, %s3950_s21  }
  0x39   : > { %p3072_p4 = pneg %p3071_p1 }
  0x3b   : > { %p3079_p13 = pnand %p3078_p9, %p3072_p4 }
  0x3d   : > { %3082 = shalt.err (!%p3079_p13)
}
  0x3e   : > { %s3965_s5 = sld [smem:[#allocation22_spill]]  ;;  %s42_s12 = sadd.s32 1, %s3225_s9 }
  0x3f   : > { %p44_p12 = scmp.ge.s32.totalorder %s42_s12, 2  ;;  %s51_s20 = sadd.s32 1, %s3217_s29 }
  0x40   : > { %p58_p0 = scmp.ne.s32.totalorder %s3217_s29, %s3213_s28  ;;  %p59_p5 = scmp.eq.s32.totalorder %s3229_s10, 0 }
  0x41   : > { %s3982_s12 = smov (%p44_p12, %s42_s12), 0  ;;  %s2408_s11 = sshll.u32 %s3225_s9, 11 }
  0x42   : > { %3966 = sst [smem:[#allocation19_spill]] %s3982_s12  ;;  %p3397_p10 = por %p59_p5, %p58_p0 }
  0x43   : > { %p3403_p6 = por %p3329_p2, %p58_p0  ;;  %s46_s24 = ssub.s32 %s3225_s9, %s3982_s12 }
  0x44   : > { %2861 = dma.hbm_to_vmem [thread:$0]  (!%p3354_p11), %s3965_s5, 1024, %s302_s25, [#allocation9], %s3949_s18, %s3949_s18, %s3950_s21  }
  0x45   : > { %p2876_p11 = scmp.lt.s32.totalorder %s3229_s10, 2  ;;  %p49_p1 = scmp.eq.s32.totalorder %s46_s24, 0 }
  0x46   : > { %s318_s25 = sand.u32 1, %s3217_s29   ;;  %s330_s1 = scalar_lea.hbm %s3937_s0, %s2408_s11 }
  0x47   : > { %s2236_s26 = sshll.u32 %s318_s25, 7  ;;  %p3420_p2 = pnand %p2876_p11, %p3397_p10 }
  0x48   : > { %s3412_s22 = scalar_select %p49_p1, %s3217_s29, %s51_s20  }
  0x49   : > { %s322_s3 = scalar_lea.vmem [#allocation2], %s2236_s26  ;;  %s319_s12 = scalar_lea.sflag [#allocation3], %s318_s25 }
  0x4a   : > { %s331_s5 = sshll.u32 %s322_s3, 4  ;;  %p3085_p4 = pneg %p3420_p2  ;;  %s332_s5 = int_to_ptr.vmem [resolvable:$true] %s331_s5 }
  0x4b   : > { %s3096_s24 = scalar_lea.vmem %s332_s5, 2048  ;;  %s3238_s20 = smov [#allocation2]  }
  0x4c   : > { %p3097_p3 = scmp.ne.s32.totalorder %s332_s5, %s3096_s24  ;;  %s3101_s9 = sshll.u32 %s3238_s20, 4  ;;  %s3102_s9 = int_to_ptr.vmem [resolvable:$false] %s3101_s9 }
  0x4d   : > { %s3103_s18 = scalar_lea.vmem %s3102_s9, 4096  ;;  %p3104_p13 = scmp.lt.s32.totalorder %s332_s5, %s3102_s9 }
  0x4e   : > { %p3099_p7 = pnand %p3097_p3, %p3085_p4  ;;  %p3105_p12 = scmp.lt.s32.totalorder %s3103_s18, %s3096_s24 }
  0x50   : > { %p3100_p9 = pneg %p3099_p7  ;;  %p3106_p0 = por %p3105_p12, %p3104_p13 }
  0x52   : > { %p3107_p5 = pnand %p3106_p0, %p3100_p9 }
  0x54   : > { %3110 = shalt.err (!%p3107_p5)
}
  0x55   : > { %s3970_s3 = smov 4   ;;  %s3971_s21 = smov 64  }
  0x56   : > { %2865 = dma.hbm_to_vmem [thread:$0]  (!%p3420_p2), %s330_s1, 2048, %s332_s5, %s319_s12, %s3971_s21, %s3971_s21, %s3970_s3  }
  0x57   : > { %343 = sbr.rel (%p3345_p8) target bundleno = 677 (0x2a5), region = 48  ;;  %s3434_s19 = sand.u32 (!%p3345_p8), 1, %s3213_s28  }
  0x58   : > { %s2240_s9 = sshll.u32 (!%p3345_p8), %s3434_s19, 7  ;;  %s346_s25 = scalar_lea.sflag (!%p3345_p8), [#allocation3], %s3434_s19 }
  0x59   : > { %s3440_s26 = scalar_lea.vmem (!%p3345_p8), [#allocation2], %s2240_s9  ;;  %p3972_p10 = scmp.ne.s32.totalorder (!%p3345_p8), %s3959_s15, 0 }
  0x5c   : > { %3188 = dma.done.wait (%p3972_p10), %s346_s25, 2048  }
  0x5d   : > { %3190 = vsyncadd (%p3972_p10), %s346_s25, 4294965248  ;;  %p3973_p11 = scmp.ne.s32.totalorder %s3957_s13, 0 }
  0x5f   : > { %3192 = dma.done.wait (%p3973_p11), [#allocation6], 4096  }
  0x60   : > { %3194 = vsyncadd (%p3973_p11), [#allocation6], 4294963200 }
  0x61   : > { %3196 = dma.done.wait (%p3973_p11), [#allocation9], 1024  }
  0x62   : > { %3198 = vsyncadd (%p3973_p11), [#allocation9], 4294966272  ;;  %v3239_v0 = vmov 0   ;;  %v2941_v1 = vld [vmem:[#allocation5 + $0xac] ss:$12 sps:$4 sm:$0xff]   ;;  %v2965_v18 = vld [vmem:[%s3440_s26] sm:$0xff]   ;;  %v469_v57 = vlaneseq }
  0x63   : > { %740 = vmatprep.mubr.bf16.mxu0 %v3239_v0  ;;  %860 = vmatprep.mubr.bf16.mxu1 %v3239_v0  ;;  %v2943_v2 = vld [vmem:[#allocation5 + $0xa8] ss:$12 sps:$4 sm:$0xff]   ;;  %v2946_v4 = vld [vmem:[#allocation5 + $0x90] ss:$12 sps:$4 sm:$0xff]   ;;  %v2949_v6 = vld [vmem:[#allocation5 + $0x78] ss:$12 sps:$4 sm:$0xff]  }
  0x64   : > { %708 = vmatprep.subr.bf16.mxu0 %v2941_v1  ;;  %v2944_v3 = vld [vmem:[#allocation5 + $0x94] ss:$12 sps:$4 sm:$0xff]   ;;  %2818 = vmatprep.subr.bf16.mxu1 %v2941_v1  ;;  %v2947_v5 = vld [vmem:[#allocation5 + $0x7c] ss:$12 sps:$4 sm:$0xff]   ;;  %v2950_v7 = vld [vmem:[#allocation5 + $0x64] ss:$12 sps:$4 sm:$0xff]  }
  0x65   : > { %709 = vmatpush1.bf16.msra.mxu0 %v2943_v2  ;;  %2826 = vmatpush1.bf16.msra.mxu1 %v2943_v2  ;;  %v2952_v8 = vld [vmem:[#allocation5 + $0x60] ss:$12 sps:$4 sm:$0xff]   ;;  %v2955_v10 = vld [vmem:[#allocation5 + $0x48] ss:$12 sps:$4 sm:$0xff]   ;;  %v2958_v12 = vld [vmem:[#allocation5 + $0x30] ss:$12 sps:$4 sm:$0xff]  }
  0x66   : > { %710 = vmatprep.subr.bf16.mxu0 %v2944_v3  ;;  %2819 = vmatprep.subr.bf16.mxu1 %v2944_v3  ;;  %v2953_v9 = vld [vmem:[#allocation5 + $0x4c] ss:$12 sps:$4 sm:$0xff]   ;;  %v2956_v11 = vld [vmem:[#allocation5 + $0x34] ss:$12 sps:$4 sm:$0xff]   ;;  %v2959_v13 = vld [vmem:[#allocation5 + $0x1c] ss:$12 sps:$4 sm:$0xff]  }
  0x67   : > { %v2961_v14 = vld [vmem:[#allocation5 + $0x18] ss:$12 sps:$4 sm:$0xff]   ;;  %v2964_v16 = vld [vmem:[#allocation5] ss:$12 sps:$4 sm:$0xff]   ;;  %v2981_v17 = vld [vmem:[#allocation5 + $0xb0] ss:$12 sps:$4 sm:$0xff]  }
  0x68   : > { %v2962_v15 = vld [vmem:[#allocation5 + $0x4] ss:$12 sps:$4 sm:$0xff]   ;;  %v2989_v21 = vld [vmem:[#allocation8 + $0x38] sm:$0xff]   ;;  %v2966_v22 = vld [vmem:[%s3440_s26 + $0x8] sm:$0xff]   ;;  %v3502_v58 = vshrl.u32 %v469_v57, 7  ;;  %s2245_s13 = sshll.u32 %s3434_s19, 8 }
  0x69   : > { %711 = vmatpush1.bf16.msra.mxu0 %v2946_v4  ;;  %2827 = vmatpush1.bf16.msra.mxu1 %v2946_v4  ;;  %v3458_v19 = vld [vmem:[%s3440_s26 + $0x60] sm:$0xff]   ;;  %v2990_v23 = vld [vmem:[#allocation8 + $0x30] sm:$0xff]   ;;  %v3465_v25 = vld [vmem:[%s3440_s26 + $0x68] sm:$0xff]   ;;  %s3606_s15 = scalar_lea.vmem [#allocation11], %s2245_s13  ;;  %s3744_s24 = scalar_lea.vmem [#allocation10], %s2240_s9 }
  0x6a   : > { %712 = vmatprep.subr.bf16.mxu0 %v2947_v5  ;;  %2820 = vmatprep.subr.bf16.mxu1 %v2947_v5  ;;  %v2982_v20 = vld [vmem:[#allocation5 + $0x98] ss:$12 sps:$4 sm:$0xff]   ;;  %v2983_v24 = vld [vmem:[#allocation5 + $0x80] ss:$12 sps:$4 sm:$0xff]   ;;  %v2984_v26 = vld [vmem:[#allocation5 + $0x68] ss:$12 sps:$4 sm:$0xff]  }
  0x6b   : > { %v2992_v27 = vld [vmem:[#allocation8 + $0x28] sm:$0xff]   ;;  %v2985_v28 = vld [vmem:[#allocation5 + $0x50] ss:$12 sps:$4 sm:$0xff]   ;;  %v2996_v29 = vld [vmem:[#allocation8 + $0x20] sm:$0xff]   ;;  %v471_v59 = vsub.s32 0, %v3502_v58  ;;  %v475_v61 = vsub.s32 1, %v3502_v58 }
  0x6c   : > { %v2967_v30 = vld [vmem:[%s3440_s26 + $0x10] sm:$0xff]   ;;  %v2986_v32 = vld [vmem:[#allocation5 + $0x38] ss:$12 sps:$4 sm:$0xff]   ;;  %v2987_v33 = vld [vmem:[#allocation5 + $0x20] ss:$12 sps:$4 sm:$0xff]   ;;  %s2505_s20 = sshll.u32 %s3221_s30, 11 }
  0x6d   : > { %713 = vmatpush1.bf16.msra.mxu0 %v2949_v6  ;;  %2828 = vmatpush1.bf16.msra.mxu1 %v2949_v6  ;;  %v3472_v31 = vld [vmem:[%s3440_s26 + $0x70] sm:$0xff]   ;;  %v2968_v34 = vld [vmem:[%s3440_s26 + $0x18] sm:$0xff]   ;;  %v2969_v38 = vld [vmem:[%s3440_s26 + $0x20] sm:$0xff]   ;;  %s2059_s18 = sshll.u32 %s3744_s24, 4  ;;  %s3846_s9 = scalar_lea.hbm %s3944_s7, %s2505_s20  ;;  %s3853_s18 = int_to_ptr.vmem [resolvable:$true] %s2059_s18 }
  0x6e   : > { %714 = vmatprep.subr.bf16.mxu0 %v2950_v7  ;;  %2821 = vmatprep.subr.bf16.mxu1 %v2950_v7  ;;  %v3479_v35 = vld [vmem:[%s3440_s26 + $0x78] sm:$0xff]   ;;  %v2988_v36 = vld [vmem:[#allocation5 + $0x8] ss:$12 sps:$4 sm:$0xff]   ;;  %v2995_v42 = vld [vmem:[#allocation7 + $0x20] sm:$0xff]   ;;  %s2506_s25 = sshll.u32 %s3221_s30, 12  ;;  %s2039_s30 = scalar_lea.sflag [#allocation4], %s3434_s19 }
  0x6f   : > { %v2991_v37 = vld [vmem:[#allocation7 + $0x38] sm:$0xff]   ;;  %v2993_v39 = vld [vmem:[#allocation7 + $0x30] sm:$0xff]   ;;  %v2994_v40 = vld [vmem:[#allocation7 + $0x28] sm:$0xff]   ;;  %s3861_s13 = scalar_lea.hbm %s3945_s8, %s2506_s25  ;;  %s3111_s17 = scalar_lea.vmem %s3853_s18, 2048 }
  0x70   : > { %v2970_v41 = vld [vmem:[%s3440_s26 + $0x28] sm:$0xff]   ;;  %v2971_v43 = vld [vmem:[%s3440_s26 + $0x30] sm:$0xff]   ;;  %v2972_v44 = vld [vmem:[%s3440_s26 + $0x38] sm:$0xff]   ;;  %p3112_p8 = scmp.ne.s32.totalorder %s3853_s18, %s3111_s17  ;;  %s3240_s12 = smov [#allocation10]  }
  0x71   : > { %715 = vmatpush1.bf16.msra.mxu0 %v2952_v8  ;;  %2829 = vmatpush1.bf16.msra.mxu1 %v2952_v8  ;;  %v2973_v45 = vld [vmem:[%s3440_s26 + $0x40] sm:$0xff]   ;;  %v2974_v46 = vld [vmem:[%s3440_s26 + $0x48] sm:$0xff]   ;;  %v2997_v47 = vld [vmem:[#allocation7 + $0x18] sm:$0xff]   ;;  %s3115_s11 = sshll.u32 %s3240_s12, 4  ;;  %s3116_s11 = int_to_ptr.vmem [resolvable:$false] %s3115_s11 }
  0x72   : > { %716 = vmatprep.subr.bf16.mxu0 %v2953_v9  ;;  %2822 = vmatprep.subr.bf16.mxu1 %v2953_v9  ;;  %v2976_v48 = vld [vmem:[%s3440_s26 + $0x50] sm:$0xff]   ;;  %v2998_v49 = vld [vmem:[#allocation8 + $0x18] sm:$0xff]   ;;  %v3001_v53 = vld [vmem:[#allocation7 + $0x8] sm:$0xff]   ;;  %p3113_p1 = pnand %p3112_p8, %p3403_p6  ;;  %s3117_s14 = scalar_lea.vmem %s3116_s11, 4096 }
  0x73   : > { %v2999_v50 = vld [vmem:[#allocation7 + $0x10] sm:$0xff]   ;;  %v2978_v52 = vld [vmem:[%s3440_s26 + $0x58] sm:$0xff]   ;;  %v3002_v54 = vld [vmem:[#allocation8 + $0x8] sm:$0xff]   ;;  %s2078_s26 = sshll.u32 %s3606_s15, 4  ;;  %p3118_p4 = scmp.lt.s32.totalorder %s3853_s18, %s3116_s11  ;;  %s3863_s26 = int_to_ptr.vmem [resolvable:$true] %s2078_s26 }
  0x74   : > { %v3000_v51 = vld [vmem:[#allocation8 + $0x10] sm:$0xff]   ;;  %v3003_v55 = vld [vmem:[#allocation7] sm:$0xff]   ;;  %p3114_p2 = pneg %p3113_p1  ;;  %p3119_p3 = scmp.lt.s32.totalorder %s3117_s14, %s3111_s17 }
  0x75   : > { %717 = vmatpush1.bf16.msra.mxu0 %v2955_v10  ;;  %2830 = vmatpush1.bf16.msra.mxu1 %v2955_v10  ;;  %v3004_v56 = vld [vmem:[#allocation8] sm:$0xff]  }
  0x76   : > { %718 = vmatprep.subr.bf16.mxu0 %v2956_v11  ;;  %2823 = vmatprep.subr.bf16.mxu1 %v2956_v11  ;;  %v3508_v60 = vld [vmem:[%s3939_s2] sm:$0x7]  ;;  %p3120_p7 = por %p3119_p3, %p3118_p4 }
  0x77   : > { %v3515_v1 = vrot.slane %v3508_v60, %v475_v61 }
  0x78   : > { %p3121_p9 = pnand %p3120_p7, %p3114_p2 }
  0x79   : > { %719 = vmatpush1.bf16.msra.mxu0 %v2958_v12  ;;  %2831 = vmatpush1.bf16.msra.mxu1 %v2958_v12 }
  0x7a   : > { %720 = vmatprep.subr.bf16.mxu0 %v2959_v13  ;;  %2824 = vmatprep.subr.bf16.mxu1 %v2959_v13 }
  0x7d   : > { %721 = vmatpush1.bf16.msra.mxu0 %v2961_v14  ;;  %2832 = vmatpush1.bf16.msra.mxu1 %v2961_v14 }
  0x7e   : > { %722 = vmatprep.subr.bf16.mxu0 %v2962_v15  ;;  %2825 = vmatprep.subr.bf16.mxu1 %v2962_v15 }
  0x81   : > { %723 = vmatpush1.bf16.msra.mxu0 %v2964_v16  ;;  %2833 = vmatpush1.bf16.msra.mxu1 %v2964_v16 }
  0x82   : > { %2674 = vmatprep.subr.bf16.mxu1 %v2981_v17  ;;  %2770 = vmatprep.subr.bf16.mxu0 %v2989_v21 }
  0x84   : > { %741 = vmatmul.mubr.bf16.vlgmr.msra.gmra.mxu0 %v2965_v18  ;;  %861 = vmatmul.mubr.bf16.vlgmr.msra.gmra.mxu1 %v3458_v19 }
  0x85   : > { %750 = vmatprep.mubr.bf16.mxu0 %v3239_v0  ;;  %870 = vmatprep.mubr.bf16.mxu1 %v3239_v0 }
  0x86   : > { %2675 = vmatpush3.bf16.msra.mxu1 %v2981_v17  ;;  %2771 = vmatpush3.bf16.msra.mxu0 %v2989_v21 }
  0x87   : > { %2676 = vmatprep.subr.bf16.mxu1 %v2982_v20  ;;  %2772 = vmatprep.subr.bf16.mxu0 %v2990_v23 }
  0x8a   : > { %2677 = vmatpush3.bf16.msra.mxu1 %v2982_v20  ;;  %2773 = vmatpush3.bf16.msra.mxu0 %v2990_v23 }
  0x8b   : > { %2678 = vmatprep.subr.bf16.mxu1 %v2983_v24  ;;  %2774 = vmatprep.subr.bf16.mxu0 %v2992_v27 }
  0x8c   : > { %751 = vmatmul.mubr.bf16.gmra.mxu0 %v2966_v22  ;;  %871 = vmatmul.mubr.bf16.gmra.mxu1 %v3465_v25 }
  0x8d   : > { %760 = vmatprep.mubr.bf16.mxu0 %v3239_v0  ;;  %880 = vmatprep.mubr.bf16.mxu1 %v3239_v0 }
  0x8e   : > { %2679 = vmatpush3.bf16.msra.mxu1 %v2983_v24  ;;  %2775 = vmatpush3.bf16.msra.mxu0 %v2992_v27 }
  0x8f   : > { %2680 = vmatprep.subr.bf16.mxu1 %v2984_v26  ;;  %2776 = vmatprep.subr.bf16.mxu0 %v2996_v29 }
  0x92   : > { %2681 = vmatpush3.bf16.msra.mxu1 %v2984_v26  ;;  %2777 = vmatpush3.bf16.msra.mxu0 %v2996_v29 }
  0x93   : > { %2682 = vmatprep.subr.bf16.mxu1 %v2985_v28  ;;  %2778 = vmatprep.subr.bf16.mxu0 %v2998_v49 }
  0x94   : > { %761 = vmatmul.mubr.bf16.gmra.mxu0 %v2967_v30  ;;  %881 = vmatmul.mubr.bf16.gmra.mxu1 %v3472_v31 }
  0x95   : > { %770 = vmatprep.mubr.bf16.mxu0 %v3239_v0  ;;  %890 = vmatprep.mubr.bf16.mxu1 %v3239_v0 }
  0x96   : > { %2683 = vmatpush3.bf16.msra.mxu1 %v2985_v28  ;;  %2779 = vmatpush3.bf16.msra.mxu0 %v2998_v49 }
  0x97   : > { %2684 = vmatprep.subr.bf16.mxu1 %v2986_v32  ;;  %2780 = vmatprep.subr.bf16.mxu0 %v3000_v51 }
  0x9a   : > { %2685 = vmatpush3.bf16.msra.mxu1 %v2986_v32  ;;  %2781 = vmatpush3.bf16.msra.mxu0 %v3000_v51 }
  0x9b   : > { %2686 = vmatprep.subr.bf16.mxu1 %v2987_v33  ;;  %2782 = vmatprep.subr.bf16.mxu0 %v3002_v54 }
  0x9c   : > { %771 = vmatmul.mubr.bf16.gmra.mxu0 %v2968_v34  ;;  %891 = vmatmul.mubr.bf16.gmra.mxu1 %v3479_v35 }
  0x9d   : > { %780 = vmatprep.mubr.bf16.mxu0 %v3239_v0  ;;  %2690 = vmatprep.mubr.bf16.mxu1 %v2965_v18 }
  0x9e   : > { %2687 = vmatpush3.bf16.msra.mxu1 %v2987_v33  ;;  %2783 = vmatpush3.bf16.msra.mxu0 %v3002_v54 }
  0x9f   : > { %2688 = vmatprep.subr.bf16.mxu1 %v2988_v36  ;;  %2784 = vmatprep.subr.bf16.mxu0 %v3004_v56 }
  0xa2   : > { %2689 = vmatpush3.bf16.msra.mxu1 %v2988_v36  ;;  %2785 = vmatpush3.bf16.msra.mxu0 %v3004_v56 }
  0xa3   : > { %2722 = vmatprep.subr.bf16.mxu1 %v2991_v37 }
  0xa4   : > { %781 = vmatmul.mubr.bf16.gmra.mxu0 %v2969_v38 }
  0xa5   : > { %790 = vmatprep.mubr.bf16.mxu0 %v3239_v0  ;;  %2691 = vmatmul.mubr.bf16.vlgmr.msra.gmra.mxu1 %v2966_v22 }
  0xa6   : > { %2694 = vmatprep.mubr.bf16.mxu1 %v2967_v30  ;;  %2723 = vmatpush3.bf16.msra.mxu1 %v2991_v37 }
  0xa7   : > { %2724 = vmatprep.subr.bf16.mxu1 %v2993_v39 }
  0xaa   : > { %2725 = vmatpush3.bf16.msra.mxu1 %v2993_v39 }
  0xab   : > { %2726 = vmatprep.subr.bf16.mxu1 %v2994_v40 }
  0xac   : > { %791 = vmatmul.mubr.bf16.gmra.mxu0 %v2970_v41 }
  0xad   : > { %800 = vmatprep.mubr.bf16.mxu0 %v3239_v0  ;;  %2695 = vmatmul.mubr.bf16.gmra.mxu1 %v2968_v34 }
  0xae   : > { %2698 = vmatprep.mubr.bf16.mxu1 %v2969_v38  ;;  %2727 = vmatpush3.bf16.msra.mxu1 %v2994_v40 }
  0xaf   : > { %2728 = vmatprep.subr.bf16.mxu1 %v2995_v42 }
  0xb2   : > { %2729 = vmatpush3.bf16.msra.mxu1 %v2995_v42 }
  0xb3   : > { %2730 = vmatprep.subr.bf16.mxu1 %v2997_v47 }
  0xb4   : > { %801 = vmatmul.mubr.bf16.gmra.mxu0 %v2971_v43 }
  0xb5   : > { %810 = vmatprep.mubr.bf16.mxu0 %v3239_v0  ;;  %2699 = vmatmul.mubr.bf16.gmra.mxu1 %v2970_v41 }
  0xb6   : > { %2702 = vmatprep.mubr.bf16.mxu1 %v2971_v43  ;;  %2731 = vmatpush3.bf16.msra.mxu1 %v2997_v47 }
  0xb7   : > { %2732 = vmatprep.subr.bf16.mxu1 %v2999_v50 }
  0xba   : > { %2733 = vmatpush3.bf16.msra.mxu1 %v2999_v50 }
  0xbb   : > { %2734 = vmatprep.subr.bf16.mxu1 %v3001_v53 }
  0xbc   : > { %811 = vmatmul.mubr.bf16.gmra.mxu0 %v2972_v44 }
  0xbd   : > { %820 = vmatprep.mubr.bf16.mxu0 %v3239_v0  ;;  %2703 = vmatmul.mubr.bf16.gmra.mxu1 %v2972_v44 }
  0xbe   : > { %2706 = vmatprep.mubr.bf16.mxu1 %v2973_v45  ;;  %2735 = vmatpush3.bf16.msra.mxu1 %v3001_v53 }
  0xbf   : > { %2736 = vmatprep.subr.bf16.mxu1 %v3003_v55 }
  0xc2   : > { %2737 = vmatpush3.bf16.msra.mxu1 %v3003_v55 }
  0xc4   : > { %821 = vmatmul.mubr.bf16.gmra.mxu0 %v2973_v45 }
  0xc5   : > { %830 = vmatprep.mubr.bf16.mxu0 %v3239_v0  ;;  %2707 = vmatmul.mubr.bf16.gmra.mxu1 %v2974_v46 }
  0xc6   : > { %2710 = vmatprep.mubr.bf16.mxu1 %v2976_v48 }
  0xcc   : > { %831 = vmatmul.mubr.bf16.gmra.mxu0 %v2974_v46 }
  0xcd   : > { %840 = vmatprep.mubr.bf16.mxu0 %v3239_v0  ;;  %2711 = vmatmul.mubr.bf16.gmra.mxu1 %v2978_v52 }
  0xce   : > { %2714 = vmatprep.mubr.bf16.mxu1 %v3458_v19 }
  0xd4   : > { %841 = vmatmul.mubr.bf16.gmra.mxu0 %v2976_v48 }
  0xd5   : > { %850 = vmatprep.mubr.bf16.mxu0 %v3239_v0  ;;  %2715 = vmatmul.mubr.bf16.gmra.mxu1 %v3465_v25  ;;  %v3512_v0 = vrot.slane %v3508_v60, %v471_v59 }
  0xd6   : > { %2718 = vmatprep.mubr.bf16.mxu1 %v3472_v31 }
  0xdc   : > { %851 = vmatmul.mubr.bf16.gmra.mxu0 %v2978_v52 }
  0xdd   : > { %2719 = vmatmul.mubr.bf16.gmra.mxu1 %v3479_v35 }
 0x144   : > { %v742_v62 = vpop.f32.mrf.mxu0  ;;  %v862_v63 = vpop.f32.mrf.mxu1 }
 0x145   : > { %v3518_v4 = vadd.f32 %v862_v63, %v3512_v0  ;;  %v743_v7 = vadd.f32 %v742_v62, %v3512_v0 }
 0x146   : > { %v744_v2 = vpop.f32.mrf.mxu0  ;;  %v864_v3 = vpop.f32.mrf.mxu1 }
 0x147   : > { %v3523_v9 = vadd.f32 %v864_v3, %v3515_v1  ;;  %v745_v11 = vadd.f32 %v744_v2, %v3515_v1  ;;  %v479_v2 = vsub.s32 2, %v3502_v58 }
 0x148   : > { %v746_v5 = vpop.f32.mrf.mxu0  ;;  %v866_v6 = vpop.f32.mrf.mxu1 }
 0x149   : > { %v747_v8 = vadd.f32 %v746_v5, %v3512_v0  ;;  %v3526_v10 = vadd.f32 %v866_v6, %v3512_v0 }
 0x14a   : > { %v748_v12 = vpop.f32.mrf.mxu0  ;;  %v868_v13 = vpop.f32.mrf.mxu1 }
 0x14b   : > { %v1062_v14 = vpack.c.bf16 %v747_v8, %v743_v7  ;;  %v749_v15 = vadd.f32 %v748_v12, %v3515_v1  ;;  %v1074_v16 = vpack.c.bf16 %v3526_v10, %v3518_v4  ;;  %v3533_v17 = vadd.f32 %v868_v13, %v3515_v1  ;;  %v3727_v4 = vld [vmem:[%s3943_s6] ss:$0 sm:$0xff] }
 0x14c   : > { %v752_v18 = vpop.f32.mrf.mxu0  ;;  %v872_v19 = vpop.f32.mrf.mxu1 }
 0x14d   : > { %v1078_v20 = vpack.c.bf16 %v749_v15, %v745_v11  ;;  %2738 = vmatprep.mubr.bf16.mxu1 %v1062_v14  ;;  %v1090_v21 = vpack.c.bf16 %v3533_v17, %v3523_v9  ;;  %v3538_v24 = vadd.f32 %v872_v19, %v3512_v0  ;;  %v753_v27 = vadd.f32 %v752_v18, %v3512_v0  ;;  %v3732_v9 = vld [vmem:[%s3941_s4] ss:$0 sm:$0xff] }
 0x14e   : > { %v754_v22 = vpop.f32.mrf.mxu0  ;;  %v874_v23 = vpop.f32.mrf.mxu1  ;;  %v3591_v19 = vrot.slane %v3508_v60, %v479_v2 }
 0x14f   : > { %2786 = vmatprep.mubr.bf16.mxu0 %v1078_v20  ;;  %v3543_v29 = vadd.f32 %v874_v23, %v3515_v1  ;;  %v755_v31 = vadd.f32 %v754_v22, %v3515_v1 }
 0x150   : > { %v756_v25 = vpop.f32.mrf.mxu0  ;;  %v876_v26 = vpop.f32.mrf.mxu1 }
 0x151   : > { %v757_v28 = vadd.f32 %v756_v25, %v3512_v0  ;;  %v3546_v30 = vadd.f32 %v876_v26, %v3512_v0 }
 0x152   : > { %v758_v32 = vpop.f32.mrf.mxu0  ;;  %v878_v33 = vpop.f32.mrf.mxu1 }
 0x153   : > { %v1063_v34 = vpack.c.bf16 %v757_v28, %v753_v27  ;;  %v759_v35 = vadd.f32 %v758_v32, %v3515_v1  ;;  %v1075_v36 = vpack.c.bf16 %v3546_v30, %v3538_v24  ;;  %v3553_v37 = vadd.f32 %v878_v33, %v3515_v1 }
 0x154   : > { %v762_v38 = vpop.f32.mrf.mxu0  ;;  %v882_v39 = vpop.f32.mrf.mxu1 }
 0x155   : > { %v1079_v40 = vpack.c.bf16 %v759_v35, %v755_v31  ;;  %2739 = vmatmul.mubr.bf16.vlgmr.msra.gmra.mxu1 %v1063_v34  ;;  %v1091_v41 = vpack.c.bf16 %v3553_v37, %v3543_v29  ;;  %v3558_v44 = vadd.f32 %v882_v39, %v3512_v0  ;;  %v763_v47 = vadd.f32 %v762_v38, %v3512_v0 }
 0x156   : > { %v764_v42 = vpop.f32.mrf.mxu0  ;;  %v884_v43 = vpop.f32.mrf.mxu1 }
 0x157   : > { %2787 = vmatmul.mubr.bf16.vlgmr.msra.gmra.mxu0 %v1079_v40  ;;  %v3563_v49 = vadd.f32 %v884_v43, %v3515_v1  ;;  %v765_v51 = vadd.f32 %v764_v42, %v3515_v1 }
 0x158   : > { %v766_v45 = vpop.f32.mrf.mxu0  ;;  %v886_v46 = vpop.f32.mrf.mxu1 }
 0x159   : > { %v767_v48 = vadd.f32 %v766_v45, %v3512_v0  ;;  %v3566_v50 = vadd.f32 %v886_v46, %v3512_v0 }
 0x15a   : > { %v768_v52 = vpop.f32.mrf.mxu0  ;;  %v888_v53 = vpop.f32.mrf.mxu1 }
 0x15b   : > { %v1064_v54 = vpack.c.bf16 %v767_v48, %v763_v47  ;;  %v769_v55 = vadd.f32 %v768_v52, %v3515_v1  ;;  %v1076_v56 = vpack.c.bf16 %v3566_v50, %v3558_v44  ;;  %v3573_v57 = vadd.f32 %v888_v53, %v3515_v1 }
 0x15c   : > { %v772_v59 = vpop.f32.mrf.mxu0  ;;  %v892_v61 = vpop.f32.mrf.mxu1 }
 0x15d   : > { %v1080_v62 = vpack.c.bf16 %v769_v55, %v765_v51  ;;  %2742 = vmatprep.mubr.bf16.mxu1 %v1064_v54  ;;  %v1092_v63 = vpack.c.bf16 %v3573_v57, %v3563_v49  ;;  %v3579_v6 = vadd.f32 %v892_v61, %v3512_v0  ;;  %v773_v11 = vadd.f32 %v772_v59, %v3512_v0 }
 0x15e   : > { %v774_v3 = vpop.f32.mrf.mxu0  ;;  %v894_v5 = vpop.f32.mrf.mxu1 }
 0x15f   : > { %2790 = vmatprep.mubr.bf16.mxu0 %v1080_v62  ;;  %v3584_v13 = vadd.f32 %v894_v5, %v3515_v1  ;;  %v775_v58 = vadd.f32 %v774_v3, %v3515_v1 }
 0x160   : > { %v776_v7 = vpop.f32.mrf.mxu0  ;;  %v896_v8 = vpop.f32.mrf.mxu1 }
 0x161   : > { %v777_v12 = vadd.f32 %v776_v7, %v3512_v0  ;;  %v3587_v14 = vadd.f32 %v896_v8, %v3512_v0 }
 0x162   : > { %v778_v15 = vpop.f32.mrf.mxu0  ;;  %v898_v18 = vpop.f32.mrf.mxu1 }
 0x163   : > { %v1065_v20 = vpack.c.bf16 %v777_v12, %v773_v11  ;;  %v779_v22 = vadd.f32 %v778_v15, %v3515_v1  ;;  %v1077_v23 = vpack.c.bf16 %v3587_v14, %v3579_v6  ;;  %v3597_v25 = vadd.f32 %v898_v18, %v3515_v1 }
 0x164   : > { %v782_v26 = vpop.f32.mrf.mxu0 }
 0x165   : > { %v1081_v27 = vpack.c.bf16 %v779_v22, %v775_v58  ;;  %2743 = vmatmul.mubr.bf16.gmra.mxu1 %v1065_v20  ;;  %v1093_v28 = vpack.c.bf16 %v3597_v25, %v3584_v13  ;;  %v2692_v31 = vpop.f32.mrf.mxu1  ;;  %v783_v39 = vadd.f32 %v782_v26, %v3512_v0 }
 0x166   : > { %v784_v32 = vpop.f32.mrf.mxu0  ;;  %v944_v60 = vadd.f32 %v2692_v31, %v3591_v19 }
 0x167   : > { %2791 = vmatmul.mubr.bf16.gmra.mxu0 %v1081_v27  ;;  %v935_v33 = vpop.f32.mrf.mxu1  ;;  %v785_v47 = vadd.f32 %v784_v32, %v3515_v1 }
 0x168   : > { %v786_v34 = vpop.f32.mrf.mxu0  ;;  %v2475_v35 = vpack.c.bf16 %v944_v60, %v944_v60  ;;  %v936_v38 = vadd.f32 %v935_v33, %v3591_v19 }
 0x169   : > { %v787_v40 = vadd.f32 %v786_v34, %v3512_v0  ;;  %v2693_v42 = vpop.f32.mrf.mxu1 }
 0x16a   : > { %v788_v43 = vpop.f32.mrf.mxu0  ;;  %2008 = vst [vmem:[%s3606_s15 + $0x14] sm:$0xf] %v2475_v35  ;;  %v2473_v45 = vpack.c.bf16 %v936_v38, %v936_v38  ;;  %v947_v46 = vadd.f32 %v2693_v42, %v3591_v19 }
 0x16b   : > { %v1066_v48 = vpack.c.bf16 %v787_v40, %v783_v39  ;;  %v789_v51 = vadd.f32 %v788_v43, %v3515_v1  ;;  %v938_v52 = vpop.f32.mrf.mxu1 }
 0x16c   : > { %v792_v53 = vpop.f32.mrf.mxu0  ;;  %2006 = vst [vmem:[%s3606_s15 + $0x4] sm:$0xf] %v2473_v45  ;;  %v2476_v54 = vpack.c.bf16 %v947_v46, %v947_v46  ;;  %v939_v55 = vadd.f32 %v938_v52, %v3591_v19 }
 0x16d   : > { %v1082_v59 = vpack.c.bf16 %v789_v51, %v785_v47  ;;  %2746 = vmatprep.mubr.bf16.mxu1 %v1066_v48  ;;  %v2696_v61 = vpop.f32.mrf.mxu1  ;;  %v793_v12 = vadd.f32 %v792_v53, %v3512_v0 }
 0x16e   : > { %v794_v62 = vpop.f32.mrf.mxu0  ;;  %2009 = vst [vmem:[%s3606_s15 + $0x1c] sm:$0xf] %v2476_v54  ;;  %v2474_v2 = vpack.c.bf16 %v939_v55, %v939_v55  ;;  %v960_v3 = vadd.f32 %v2696_v61, %v3591_v19 }
 0x16f   : > { %2794 = vmatprep.mubr.bf16.mxu0 %v1082_v59  ;;  %v951_v5 = vpop.f32.mrf.mxu1  ;;  %v795_v26 = vadd.f32 %v794_v62, %v3515_v1 }
 0x170   : > { %v796_v7 = vpop.f32.mrf.mxu0  ;;  %2007 = vst [vmem:[%s3606_s15 + $0xc] sm:$0xf] %v2474_v2  ;;  %v2479_v8 = vpack.c.bf16 %v960_v3, %v960_v3  ;;  %v952_v11 = vadd.f32 %v951_v5, %v3591_v19 }
 0x171   : > { %v797_v58 = vadd.f32 %v796_v7, %v3512_v0  ;;  %v2697_v15 = vpop.f32.mrf.mxu1 }
 0x172   : > { %v798_v18 = vpop.f32.mrf.mxu0  ;;  %2012 = vst [vmem:[%s3606_s15 + $0x34] sm:$0xf] %v2479_v8  ;;  %v2477_v20 = vpack.c.bf16 %v952_v11, %v952_v11  ;;  %v963_v22 = vadd.f32 %v2697_v15, %v3591_v19 }
 0x173   : > { %v1067_v27 = vpack.c.bf16 %v797_v58, %v793_v12  ;;  %v799_v31 = vadd.f32 %v798_v18, %v3515_v1  ;;  %v954_v32 = vpop.f32.mrf.mxu1 }
 0x174   : > { %v802_v60 = vpop.f32.mrf.mxu0  ;;  %2010 = vst [vmem:[%s3606_s15 + $0x24] sm:$0xf] %v2477_v20  ;;  %v2480_v33 = vpack.c.bf16 %v963_v22, %v963_v22  ;;  %v955_v34 = vadd.f32 %v954_v32, %v3591_v19 }
 0x175   : > { %v1083_v35 = vpack.c.bf16 %v799_v31, %v795_v26  ;;  %2747 = vmatmul.mubr.bf16.gmra.mxu1 %v1067_v27  ;;  %v2700_v38 = vpop.f32.mrf.mxu1  ;;  %v803_v48 = vadd.f32 %v802_v60, %v3512_v0 }
 0x176   : > { %v804_v39 = vpop.f32.mrf.mxu0  ;;  %2013 = vst [vmem:[%s3606_s15 + $0x3c] sm:$0xf] %v2480_v33  ;;  %v2478_v40 = vpack.c.bf16 %v955_v34, %v955_v34  ;;  %v976_v42 = vadd.f32 %v2700_v38, %v3591_v19 }
 0x177   : > { %2795 = vmatmul.mubr.bf16.gmra.mxu0 %v1083_v35  ;;  %v967_v43 = vpop.f32.mrf.mxu1  ;;  %v805_v59 = vadd.f32 %v804_v39, %v3515_v1 }
 0x178   : > { %v806_v45 = vpop.f32.mrf.mxu0  ;;  %2011 = vst [vmem:[%s3606_s15 + $0x2c] sm:$0xf] %v2478_v40  ;;  %v2483_v46 = vpack.c.bf16 %v976_v42, %v976_v42  ;;  %v968_v47 = vadd.f32 %v967_v43, %v3591_v19 }
 0x179   : > { %v807_v51 = vadd.f32 %v806_v45, %v3512_v0  ;;  %v2701_v52 = vpop.f32.mrf.mxu1 }
 0x17a   : > { %v808_v53 = vpop.f32.mrf.mxu0  ;;  %2016 = vst [vmem:[%s3606_s15 + $0x54] sm:$0xf] %v2483_v46  ;;  %v2481_v54 = vpack.c.bf16 %v968_v47, %v968_v47  ;;  %v979_v55 = vadd.f32 %v2701_v52, %v3591_v19 }
 0x17b   : > { %v1068_v61 = vpack.c.bf16 %v807_v51, %v803_v48  ;;  %v809_v62 = vadd.f32 %v808_v53, %v3515_v1  ;;  %v970_v2 = vpop.f32.mrf.mxu1 }
 0x17c   : > { %v812_v3 = vpop.f32.mrf.mxu0  ;;  %2014 = vst [vmem:[%s3606_s15 + $0x44] sm:$0xf] %v2481_v54  ;;  %v2484_v5 = vpack.c.bf16 %v979_v55, %v979_v55  ;;  %v971_v7 = vadd.f32 %v970_v2, %v3591_v19 }
 0x17d   : > { %v1084_v8 = vpack.c.bf16 %v809_v62, %v805_v59  ;;  %2750 = vmatprep.mubr.bf16.mxu1 %v1068_v61  ;;  %v2704_v11 = vpop.f32.mrf.mxu1  ;;  %v813_v27 = vadd.f32 %v812_v3, %v3512_v0 }
 0x17e   : > { %v814_v12 = vpop.f32.mrf.mxu0  ;;  %2017 = vst [vmem:[%s3606_s15 + $0x5c] sm:$0xf] %v2484_v5  ;;  %v2482_v58 = vpack.c.bf16 %v971_v7, %v971_v7  ;;  %v992_v15 = vadd.f32 %v2704_v11, %v3591_v19 }
 0x17f   : > { %2798 = vmatprep.mubr.bf16.mxu0 %v1084_v8  ;;  %v983_v18 = vpop.f32.mrf.mxu1  ;;  %v815_v35 = vadd.f32 %v814_v12, %v3515_v1 }
 0x180   : > { %v816_v20 = vpop.f32.mrf.mxu0  ;;  %2015 = vst [vmem:[%s3606_s15 + $0x4c] sm:$0xf] %v2482_v58  ;;  %v2487_v22 = vpack.c.bf16 %v992_v15, %v992_v15  ;;  %v984_v26 = vadd.f32 %v983_v18, %v3591_v19 }
 0x181   : > { %v817_v31 = vadd.f32 %v816_v20, %v3512_v0  ;;  %v2705_v32 = vpop.f32.mrf.mxu1 }
 0x182   : > { %v818_v60 = vpop.f32.mrf.mxu0  ;;  %2020 = vst [vmem:[%s3606_s15 + $0x74] sm:$0xf] %v2487_v22  ;;  %v2485_v33 = vpack.c.bf16 %v984_v26, %v984_v26  ;;  %v995_v34 = vadd.f32 %v2705_v32, %v3591_v19 }
 0x183   : > { %v1069_v38 = vpack.c.bf16 %v817_v31, %v813_v27  ;;  %v819_v39 = vadd.f32 %v818_v60, %v3515_v1  ;;  %v986_v40 = vpop.f32.mrf.mxu1 }
 0x184   : > { %v822_v42 = vpop.f32.mrf.mxu0  ;;  %2018 = vst [vmem:[%s3606_s15 + $0x64] sm:$0xf] %v2485_v33  ;;  %v2488_v43 = vpack.c.bf16 %v995_v34, %v995_v34  ;;  %v987_v45 = vadd.f32 %v986_v40, %v3591_v19 }
 0x185   : > { %v1085_v46 = vpack.c.bf16 %v819_v39, %v815_v35  ;;  %2751 = vmatmul.mubr.bf16.gmra.mxu1 %v1069_v38  ;;  %v2708_v47 = vpop.f32.mrf.mxu1  ;;  %v823_v61 = vadd.f32 %v822_v42, %v3512_v0 }
 0x186   : > { %v824_v48 = vpop.f32.mrf.mxu0  ;;  %2021 = vst [vmem:[%s3606_s15 + $0x7c] sm:$0xf] %v2488_v43  ;;  %v2486_v51 = vpack.c.bf16 %v987_v45, %v987_v45  ;;  %v1008_v52 = vadd.f32 %v2708_v47, %v3591_v19 }
 0x187   : > { %2799 = vmatmul.mubr.bf16.gmra.mxu0 %v1085_v46  ;;  %v999_v53 = vpop.f32.mrf.mxu1  ;;  %v825_v8 = vadd.f32 %v824_v48, %v3515_v1 }
 0x188   : > { %v826_v54 = vpop.f32.mrf.mxu0  ;;  %2019 = vst [vmem:[%s3606_s15 + $0x6c] sm:$0xf] %v2486_v51  ;;  %v2491_v55 = vpack.c.bf16 %v1008_v52, %v1008_v52  ;;  %v1000_v59 = vadd.f32 %v999_v53, %v3591_v19 }
 0x189   : > { %v827_v62 = vadd.f32 %v826_v54, %v3512_v0  ;;  %v2709_v2 = vpop.f32.mrf.mxu1 }
 0x18a   : > { %v828_v3 = vpop.f32.mrf.mxu0  ;;  %2024 = vst [vmem:[%s3606_s15 + $0x94] sm:$0xf] %v2491_v55  ;;  %v2489_v5 = vpack.c.bf16 %v1000_v59, %v1000_v59  ;;  %v1011_v7 = vadd.f32 %v2709_v2, %v3591_v19 }
 0x18b   : > { %v1070_v11 = vpack.c.bf16 %v827_v62, %v823_v61  ;;  %v829_v12 = vadd.f32 %v828_v3, %v3515_v1  ;;  %v1002_v58 = vpop.f32.mrf.mxu1 }
 0x18c   : > { %v832_v15 = vpop.f32.mrf.mxu0  ;;  %2022 = vst [vmem:[%s3606_s15 + $0x84] sm:$0xf] %v2489_v5  ;;  %v2492_v18 = vpack.c.bf16 %v1011_v7, %v1011_v7  ;;  %v1003_v20 = vadd.f32 %v1002_v58, %v3591_v19 }
 0x18d   : > { %v1086_v22 = vpack.c.bf16 %v829_v12, %v825_v8  ;;  %2754 = vmatprep.mubr.bf16.mxu1 %v1070_v11  ;;  %v2712_v26 = vpop.f32.mrf.mxu1  ;;  %v833_v38 = vadd.f32 %v832_v15, %v3512_v0 }
 0x18e   : > { %v834_v27 = vpop.f32.mrf.mxu0  ;;  %2025 = vst [vmem:[%s3606_s15 + $0x9c] sm:$0xf] %v2492_v18  ;;  %v2490_v31 = vpack.c.bf16 %v1003_v20, %v1003_v20  ;;  %v1024_v32 = vadd.f32 %v2712_v26, %v3591_v19 }
 0x18f   : > { %2802 = vmatprep.mubr.bf16.mxu0 %v1086_v22  ;;  %v1015_v60 = vpop.f32.mrf.mxu1  ;;  %v835_v46 = vadd.f32 %v834_v27, %v3515_v1 }
 0x190   : > { %v836_v33 = vpop.f32.mrf.mxu0  ;;  %2023 = vst [vmem:[%s3606_s15 + $0x8c] sm:$0xf] %v2490_v31  ;;  %v2495_v34 = vpack.c.bf16 %v1024_v32, %v1024_v32  ;;  %v1016_v35 = vadd.f32 %v1015_v60, %v3591_v19 }
 0x191   : > { %v837_v39 = vadd.f32 %v836_v33, %v3512_v0  ;;  %v2713_v40 = vpop.f32.mrf.mxu1 }
 0x192   : > { %v838_v42 = vpop.f32.mrf.mxu0  ;;  %2028 = vst [vmem:[%s3606_s15 + $0xb4] sm:$0xf] %v2495_v34  ;;  %v2493_v43 = vpack.c.bf16 %v1016_v35, %v1016_v35  ;;  %v1027_v45 = vadd.f32 %v2713_v40, %v3591_v19 }
 0x193   : > { %v1071_v47 = vpack.c.bf16 %v837_v39, %v833_v38  ;;  %v839_v48 = vadd.f32 %v838_v42, %v3515_v1  ;;  %v1018_v51 = vpop.f32.mrf.mxu1 }
 0x194   : > { %v842_v52 = vpop.f32.mrf.mxu0  ;;  %2026 = vst [vmem:[%s3606_s15 + $0xa4] sm:$0xf] %v2493_v43  ;;  %v2496_v53 = vpack.c.bf16 %v1027_v45, %v1027_v45  ;;  %v1019_v54 = vadd.f32 %v1018_v51, %v3591_v19 }
 0x195   : > { %v1087_v55 = vpack.c.bf16 %v839_v48, %v835_v46  ;;  %2755 = vmatmul.mubr.bf16.gmra.mxu1 %v1071_v47  ;;  %v2716_v59 = vpop.f32.mrf.mxu1  ;;  %v843_v11 = vadd.f32 %v842_v52, %v3512_v0 }
 0x196   : > { %v844_v61 = vpop.f32.mrf.mxu0  ;;  %2029 = vst [vmem:[%s3606_s15 + $0xbc] sm:$0xf] %v2496_v53  ;;  %v2494_v62 = vpack.c.bf16 %v1019_v54, %v1019_v54  ;;  %v1040_v2 = vadd.f32 %v2716_v59, %v3591_v19 }
 0x197   : > { %2803 = vmatmul.mubr.bf16.gmra.mxu0 %v1087_v55  ;;  %v1031_v3 = vpop.f32.mrf.mxu1  ;;  %v845_v22 = vadd.f32 %v844_v61, %v3515_v1 }
 0x198   : > { %v846_v5 = vpop.f32.mrf.mxu0  ;;  %2027 = vst [vmem:[%s3606_s15 + $0xac] sm:$0xf] %v2494_v62  ;;  %v2499_v7 = vpack.c.bf16 %v1040_v2, %v1040_v2  ;;  %v1032_v8 = vadd.f32 %v1031_v3, %v3591_v19 }
 0x199   : > { %v847_v12 = vadd.f32 %v846_v5, %v3512_v0  ;;  %v2717_v58 = vpop.f32.mrf.mxu1 }
 0x19a   : > { %v848_v15 = vpop.f32.mrf.mxu0  ;;  %2032 = vst [vmem:[%s3606_s15 + $0xd4] sm:$0xf] %v2499_v7  ;;  %v2497_v18 = vpack.c.bf16 %v1032_v8, %v1032_v8  ;;  %v1043_v20 = vadd.f32 %v2717_v58, %v3591_v19 }
 0x19b   : > { %v1072_v26 = vpack.c.bf16 %v847_v12, %v843_v11  ;;  %v849_v27 = vadd.f32 %v848_v15, %v3515_v1  ;;  %v1034_v31 = vpop.f32.mrf.mxu1 }
 0x19c   : > { %v852_v32 = vpop.f32.mrf.mxu0  ;;  %2030 = vst [vmem:[%s3606_s15 + $0xc4] sm:$0xf] %v2497_v18  ;;  %v2500_v60 = vpack.c.bf16 %v1043_v20, %v1043_v20  ;;  %v1035_v33 = vadd.f32 %v1034_v31, %v3591_v19 }
 0x19d   : > { %v1088_v34 = vpack.c.bf16 %v849_v27, %v845_v22  ;;  %2758 = vmatprep.mubr.bf16.mxu1 %v1072_v26  ;;  %v2720_v35 = vpop.f32.mrf.mxu1  ;;  %v853_v47 = vadd.f32 %v852_v32, %v3512_v0 }
 0x19e   : > { %v854_v38 = vpop.f32.mrf.mxu0  ;;  %2033 = vst [vmem:[%s3606_s15 + $0xdc] sm:$0xf] %v2500_v60  ;;  %v2498_v39 = vpack.c.bf16 %v1035_v33, %v1035_v33  ;;  %v1056_v40 = vadd.f32 %v2720_v35, %v3591_v19 }
 0x19f   : > { %2806 = vmatprep.mubr.bf16.mxu0 %v1088_v34  ;;  %v1047_v42 = vpop.f32.mrf.mxu1  ;;  %v855_v55 = vadd.f32 %v854_v38, %v3515_v1 }
 0x1a0   : > { %v856_v43 = vpop.f32.mrf.mxu0  ;;  %2031 = vst [vmem:[%s3606_s15 + $0xcc] sm:$0xf] %v2498_v39  ;;  %v2503_v45 = vpack.c.bf16 %v1056_v40, %v1056_v40  ;;  %v1048_v46 = vadd.f32 %v1047_v42, %v3591_v19 }
 0x1a1   : > { %v857_v48 = vadd.f32 %v856_v43, %v3512_v0  ;;  %v2721_v51 = vpop.f32.mrf.mxu1 }
 0x1a2   : > { %v858_v52 = vpop.f32.mrf.mxu0  ;;  %2036 = vst [vmem:[%s3606_s15 + $0xf4] sm:$0xf] %v2503_v45  ;;  %v2501_v53 = vpack.c.bf16 %v1048_v46, %v1048_v46  ;;  %v1059_v54 = vadd.f32 %v2721_v51, %v3591_v19 }
 0x1a3   : > { %v1073_v59 = vpack.c.bf16 %v857_v48, %v853_v47  ;;  %v859_v61 = vadd.f32 %v858_v52, %v3515_v1  ;;  %v1050_v62 = vpop.f32.mrf.mxu1 }
 0x1a4   : > { %2034 = vst [vmem:[%s3606_s15 + $0xe4] sm:$0xf] %v2501_v53  ;;  %v2504_v2 = vpack.c.bf16 %v1059_v54, %v1059_v54  ;;  %v1051_v3 = vadd.f32 %v1050_v62, %v3591_v19 }
 0x1a5   : > { %v1089_v5 = vpack.c.bf16 %v859_v61, %v855_v55  ;;  %2759 = vmatmul.mubr.bf16.gmra.mxu1 %v1073_v59 }
 0x1a6   : > { %2762 = vmatprep.mubr.bf16.mxu1 %v1074_v16  ;;  %2037 = vst [vmem:[%s3606_s15 + $0xfc] sm:$0xf] %v2504_v2  ;;  %v2502_v0 = vpack.c.bf16 %v1051_v3, %v1051_v3 }
 0x1a7   : > { %2807 = vmatmul.mubr.bf16.gmra.mxu0 %v1089_v5 }
 0x1a8   : > { %2810 = vmatprep.mubr.bf16.mxu0 %v1090_v21  ;;  %2035 = vst [vmem:[%s3606_s15 + $0xec] sm:$0xf] %v2502_v0 }
 0x1ad   : > { %2763 = vmatmul.mubr.bf16.gmra.mxu1 %v1075_v36 }
 0x1ae   : > { %2766 = vmatprep.mubr.bf16.mxu1 %v1076_v56 }
 0x1af   : > { %2811 = vmatmul.mubr.bf16.gmra.mxu0 %v1091_v41 }
 0x1b0   : > { %2814 = vmatprep.mubr.bf16.mxu0 %v1092_v63 }
 0x1b5   : > { %2767 = vmatmul.mubr.bf16.gmra.mxu1 %v1077_v23 }
 0x1b7   : > { %2815 = vmatmul.mubr.bf16.gmra.mxu0 %v1093_v28 }
 0x215   : > { %v2740_v1 = vpop.f32.mrf.mxu1 }
 0x216   : > { %v1208_v29 = vadd.f32 %v2740_v1, %v3732_v9 }
 0x217   : > { %v1199_v10 = vpop.f32.mrf.mxu1  ;;  %v2788_v16 = vpop.f32.mrf.mxu0 }
 0x218   : > { %v1440_v17 = vadd.f32 %v2788_v16, %v3727_v4  ;;  %v1200_v41 = vadd.f32 %v3732_v9, %v1199_v10 }
 0x219   : > { %v2741_v21 = vpop.f32.mrf.mxu1  ;;  %v1431_v24 = vpop.f32.mrf.mxu0 }
 0x21a   : > { %v2443_v30 = vpack.c.bf16 %v1440_v17, %v1440_v17  ;;  %v1211_v36 = vadd.f32 %v2741_v21, %v3732_v9  ;;  %v1432_v37 = vadd.f32 %v3727_v4, %v1431_v24 }
 0x21b   : > { %v1202_v44 = vpop.f32.mrf.mxu1  ;;  %v2789_v49 = vpop.f32.mrf.mxu0 }
 0x21c   : > { %1848 = vst [vmem:[%s3606_s15 + $0x10] sm:$0xf] %v2443_v30  ;;  %v2515_v50 = vpack.c.bf16 %v1211_v36, %v1208_v29  ;;  %v2441_v56 = vpack.c.bf16 %v1432_v37, %v1432_v37  ;;  %v1203_v57 = vadd.f32 %v3732_v9, %v1202_v44  ;;  %v1443_v63 = vadd.f32 %v2789_v49, %v3727_v4 }
 0x21d   : > { %v1434_v6 = vpop.f32.mrf.mxu0 }
 0x21e   : > { %2587 = vst [vmem:[%s3744_s24 + $0x8] sm:$0xff] %v2515_v50   ;;  %1846 = vst [vmem:[%s3606_s15] sm:$0xf] %v2441_v56  ;;  %v2510_v13 = vpack.c.bf16 %v1203_v57, %v1200_v41  ;;  %v2444_v14 = vpack.c.bf16 %v1443_v63, %v1443_v63  ;;  %v1435_v19 = vadd.f32 %v3727_v4, %v1434_v6 }
 0x220   : > { %2511 = vst [vmem:[%s3744_s24] sm:$0xff] %v2510_v13   ;;  %1849 = vst [vmem:[%s3606_s15 + $0x18] sm:$0xf] %v2444_v14  ;;  %v2442_v23 = vpack.c.bf16 %v1435_v19, %v1435_v19 }
 0x222   : > { %1847 = vst [vmem:[%s3606_s15 + $0x8] sm:$0xf] %v2442_v23 }
 0x225   : > { %v2744_v25 = vpop.f32.mrf.mxu1 }
 0x226   : > { %v1224_v58 = vadd.f32 %v2744_v25, %v3732_v9 }
 0x227   : > { %v1215_v28 = vpop.f32.mrf.mxu1  ;;  %v2792_v7 = vpop.f32.mrf.mxu0 }
 0x228   : > { %v1456_v8 = vadd.f32 %v2792_v7, %v3727_v4  ;;  %v1216_v22 = vadd.f32 %v3732_v9, %v1215_v28 }
 0x229   : > { %v2745_v11 = vpop.f32.mrf.mxu1  ;;  %v1447_v12 = vpop.f32.mrf.mxu0 }
 0x22a   : > { %v2447_v15 = vpack.c.bf16 %v1456_v8, %v1456_v8  ;;  %v1227_v18 = vadd.f32 %v2745_v11, %v3732_v9  ;;  %v1448_v20 = vadd.f32 %v3727_v4, %v1447_v12 }
 0x22b   : > { %v1218_v26 = vpop.f32.mrf.mxu1  ;;  %v2793_v27 = vpop.f32.mrf.mxu0 }
 0x22c   : > { %1852 = vst [vmem:[%s3606_s15 + $0x30] sm:$0xf] %v2447_v15  ;;  %v2525_v31 = vpack.c.bf16 %v1227_v18, %v1224_v58  ;;  %v2445_v32 = vpack.c.bf16 %v1448_v20, %v1448_v20  ;;  %v1219_v60 = vadd.f32 %v3732_v9, %v1218_v26  ;;  %v1459_v33 = vadd.f32 %v2793_v27, %v3727_v4 }
 0x22d   : > { %v1450_v34 = vpop.f32.mrf.mxu0 }
 0x22e   : > { %2589 = vst [vmem:[%s3744_s24 + $0x18] sm:$0xff] %v2525_v31   ;;  %1850 = vst [vmem:[%s3606_s15 + $0x20] sm:$0xf] %v2445_v32  ;;  %v2520_v35 = vpack.c.bf16 %v1219_v60, %v1216_v22  ;;  %v2448_v38 = vpack.c.bf16 %v1459_v33, %v1459_v33  ;;  %v1451_v39 = vadd.f32 %v3727_v4, %v1450_v34 }
 0x230   : > { %2588 = vst [vmem:[%s3744_s24 + $0x10] sm:$0xff] %v2520_v35   ;;  %1853 = vst [vmem:[%s3606_s15 + $0x38] sm:$0xf] %v2448_v38  ;;  %v2446_v40 = vpack.c.bf16 %v1451_v39, %v1451_v39 }
 0x232   : > { %1851 = vst [vmem:[%s3606_s15 + $0x28] sm:$0xf] %v2446_v40 }
 0x235   : > { %v2748_v42 = vpop.f32.mrf.mxu1 }
 0x236   : > { %v1240_v51 = vadd.f32 %v2748_v42, %v3732_v9 }
 0x237   : > { %v1231_v43 = vpop.f32.mrf.mxu1  ;;  %v2796_v45 = vpop.f32.mrf.mxu0 }
 0x238   : > { %v1472_v46 = vadd.f32 %v2796_v45, %v3727_v4  ;;  %v1232_v55 = vadd.f32 %v3732_v9, %v1231_v43 }
 0x239   : > { %v2749_v47 = vpop.f32.mrf.mxu1  ;;  %v1463_v48 = vpop.f32.mrf.mxu0 }
 0x23a   : > { %v2451_v52 = vpack.c.bf16 %v1472_v46, %v1472_v46  ;;  %v1243_v53 = vadd.f32 %v2749_v47, %v3732_v9  ;;  %v1464_v54 = vadd.f32 %v3727_v4, %v1463_v48 }
 0x23b   : > { %v1234_v59 = vpop.f32.mrf.mxu1  ;;  %v2797_v61 = vpop.f32.mrf.mxu0 }
 0x23c   : > { %1856 = vst [vmem:[%s3606_s15 + $0x50] sm:$0xf] %v2451_v52  ;;  %v2535_v62 = vpack.c.bf16 %v1243_v53, %v1240_v51  ;;  %v2449_v2 = vpack.c.bf16 %v1464_v54, %v1464_v54  ;;  %v1235_v3 = vadd.f32 %v3732_v9, %v1234_v59  ;;  %v1475_v5 = vadd.f32 %v2797_v61, %v3727_v4 }
 0x23d   : > { %v1466_v0 = vpop.f32.mrf.mxu0 }
 0x23e   : > { %2591 = vst [vmem:[%s3744_s24 + $0x28] sm:$0xff] %v2535_v62   ;;  %1854 = vst [vmem:[%s3606_s15 + $0x40] sm:$0xf] %v2449_v2  ;;  %v2530_v1 = vpack.c.bf16 %v1235_v3, %v1232_v55  ;;  %v2452_v10 = vpack.c.bf16 %v1475_v5, %v1475_v5  ;;  %v1467_v16 = vadd.f32 %v3727_v4, %v1466_v0 }
 0x240   : > { %2590 = vst [vmem:[%s3744_s24 + $0x20] sm:$0xff] %v2530_v1   ;;  %1857 = vst [vmem:[%s3606_s15 + $0x58] sm:$0xf] %v2452_v10  ;;  %v2450_v17 = vpack.c.bf16 %v1467_v16, %v1467_v16 }
 0x242   : > { %1855 = vst [vmem:[%s3606_s15 + $0x48] sm:$0xf] %v2450_v17 }
 0x245   : > { %v2752_v21 = vpop.f32.mrf.mxu1 }
 0x246   : > { %v1256_v41 = vadd.f32 %v2752_v21, %v3732_v9 }
 0x247   : > { %v1247_v24 = vpop.f32.mrf.mxu1  ;;  %v2800_v29 = vpop.f32.mrf.mxu0 }
 0x248   : > { %v1488_v30 = vadd.f32 %v2800_v29, %v3727_v4  ;;  %v1248_v56 = vadd.f32 %v3732_v9, %v1247_v24 }
 0x249   : > { %v2753_v36 = vpop.f32.mrf.mxu1  ;;  %v1479_v37 = vpop.f32.mrf.mxu0 }
 0x24a   : > { %v2455_v44 = vpack.c.bf16 %v1488_v30, %v1488_v30  ;;  %v1259_v49 = vadd.f32 %v2753_v36, %v3732_v9  ;;  %v1480_v50 = vadd.f32 %v3727_v4, %v1479_v37 }
 0x24b   : > { %v1250_v57 = vpop.f32.mrf.mxu1  ;;  %v2801_v63 = vpop.f32.mrf.mxu0 }
 0x24c   : > { %1860 = vst [vmem:[%s3606_s15 + $0x70] sm:$0xf] %v2455_v44  ;;  %v2545_v6 = vpack.c.bf16 %v1259_v49, %v1256_v41  ;;  %v2453_v13 = vpack.c.bf16 %v1480_v50, %v1480_v50  ;;  %v1251_v14 = vadd.f32 %v3732_v9, %v1250_v57  ;;  %v1491_v19 = vadd.f32 %v2801_v63, %v3727_v4 }
 0x24d   : > { %v1482_v23 = vpop.f32.mrf.mxu0 }
 0x24e   : > { %2593 = vst [vmem:[%s3744_s24 + $0x38] sm:$0xff] %v2545_v6   ;;  %1858 = vst [vmem:[%s3606_s15 + $0x60] sm:$0xf] %v2453_v13  ;;  %v2540_v25 = vpack.c.bf16 %v1251_v14, %v1248_v56  ;;  %v2456_v28 = vpack.c.bf16 %v1491_v19, %v1491_v19  ;;  %v1483_v7 = vadd.f32 %v3727_v4, %v1482_v23 }
 0x250   : > { %2592 = vst [vmem:[%s3744_s24 + $0x30] sm:$0xff] %v2540_v25   ;;  %1861 = vst [vmem:[%s3606_s15 + $0x78] sm:$0xf] %v2456_v28  ;;  %v2454_v8 = vpack.c.bf16 %v1483_v7, %v1483_v7 }
 0x252   : > { %1859 = vst [vmem:[%s3606_s15 + $0x68] sm:$0xf] %v2454_v8 }
 0x255   : > { %v2756_v11 = vpop.f32.mrf.mxu1 }
 0x256   : > { %v1272_v22 = vadd.f32 %v2756_v11, %v3732_v9 }
 0x257   : > { %v1263_v12 = vpop.f32.mrf.mxu1  ;;  %v2804_v58 = vpop.f32.mrf.mxu0 }
 0x258   : > { %v1504_v15 = vadd.f32 %v2804_v58, %v3727_v4  ;;  %v1264_v32 = vadd.f32 %v3732_v9, %v1263_v12 }
 0x259   : > { %v2757_v18 = vpop.f32.mrf.mxu1  ;;  %v1495_v20 = vpop.f32.mrf.mxu0 }
 0x25a   : > { %v2459_v26 = vpack.c.bf16 %v1504_v15, %v1504_v15  ;;  %v1275_v27 = vadd.f32 %v2757_v18, %v3732_v9  ;;  %v1496_v31 = vadd.f32 %v3727_v4, %v1495_v20 }
 0x25b   : > { %v1266_v60 = vpop.f32.mrf.mxu1  ;;  %v2805_v33 = vpop.f32.mrf.mxu0 }
 0x25c   : > { %1864 = vst [vmem:[%s3606_s15 + $0x90] sm:$0xf] %v2459_v26  ;;  %v2555_v34 = vpack.c.bf16 %v1275_v27, %v1272_v22  ;;  %v2457_v35 = vpack.c.bf16 %v1496_v31, %v1496_v31  ;;  %v1267_v38 = vadd.f32 %v3732_v9, %v1266_v60  ;;  %v1507_v39 = vadd.f32 %v2805_v33, %v3727_v4 }
 0x25d   : > { %v1498_v40 = vpop.f32.mrf.mxu0 }
 0x25e   : > { %2595 = vst [vmem:[%s3744_s24 + $0x48] sm:$0xff] %v2555_v34   ;;  %1862 = vst [vmem:[%s3606_s15 + $0x80] sm:$0xf] %v2457_v35  ;;  %v2550_v42 = vpack.c.bf16 %v1267_v38, %v1264_v32  ;;  %v2460_v43 = vpack.c.bf16 %v1507_v39, %v1507_v39  ;;  %v1499_v45 = vadd.f32 %v3727_v4, %v1498_v40 }
 0x260   : > { %2594 = vst [vmem:[%s3744_s24 + $0x40] sm:$0xff] %v2550_v42   ;;  %1865 = vst [vmem:[%s3606_s15 + $0x98] sm:$0xf] %v2460_v43  ;;  %v2458_v46 = vpack.c.bf16 %v1499_v45, %v1499_v45 }
 0x262   : > { %1863 = vst [vmem:[%s3606_s15 + $0x88] sm:$0xf] %v2458_v46 }
 0x265   : > { %v2760_v47 = vpop.f32.mrf.mxu1 }
 0x266   : > { %v1288_v55 = vadd.f32 %v2760_v47, %v3732_v9 }
 0x267   : > { %v1279_v48 = vpop.f32.mrf.mxu1  ;;  %v2808_v51 = vpop.f32.mrf.mxu0 }
 0x268   : > { %v1520_v52 = vadd.f32 %v2808_v51, %v3727_v4  ;;  %v1280_v2 = vadd.f32 %v3732_v9, %v1279_v48 }
 0x269   : > { %v2761_v53 = vpop.f32.mrf.mxu1  ;;  %v1511_v54 = vpop.f32.mrf.mxu0 }
 0x26a   : > { %v2463_v59 = vpack.c.bf16 %v1520_v52, %v1520_v52  ;;  %v1291_v61 = vadd.f32 %v2761_v53, %v3732_v9  ;;  %v1512_v62 = vadd.f32 %v3727_v4, %v1511_v54 }
 0x26b   : > { %v1282_v3 = vpop.f32.mrf.mxu1  ;;  %v2809_v5 = vpop.f32.mrf.mxu0 }
 0x26c   : > { %1868 = vst [vmem:[%s3606_s15 + $0xb0] sm:$0xf] %v2463_v59  ;;  %v2565_v0 = vpack.c.bf16 %v1291_v61, %v1288_v55  ;;  %v2461_v1 = vpack.c.bf16 %v1512_v62, %v1512_v62  ;;  %v1283_v10 = vadd.f32 %v3732_v9, %v1282_v3  ;;  %v1523_v16 = vadd.f32 %v2809_v5, %v3727_v4 }
 0x26d   : > { %v2764_v17 = vpop.f32.mrf.mxu1  ;;  %v1514_v21 = vpop.f32.mrf.mxu0 }
 0x26e   : > { %2597 = vst [vmem:[%s3744_s24 + $0x58] sm:$0xff] %v2565_v0   ;;  %1866 = vst [vmem:[%s3606_s15 + $0xa0] sm:$0xf] %v2461_v1  ;;  %v2560_v24 = vpack.c.bf16 %v1283_v10, %v1280_v2  ;;  %v2464_v29 = vpack.c.bf16 %v1523_v16, %v1523_v16  ;;  %v1515_v30 = vadd.f32 %v3727_v4, %v1514_v21 }
 0x26f   : > { %v1295_v36 = vpop.f32.mrf.mxu1  ;;  %v2812_v37 = vpop.f32.mrf.mxu0  ;;  %v1304_v56 = vadd.f32 %v2764_v17, %v3732_v9 }
 0x270   : > { %2596 = vst [vmem:[%s3744_s24 + $0x50] sm:$0xff] %v2560_v24   ;;  %1869 = vst [vmem:[%s3606_s15 + $0xb8] sm:$0xf] %v2464_v29  ;;  %v2462_v41 = vpack.c.bf16 %v1515_v30, %v1515_v30  ;;  %v1536_v44 = vadd.f32 %v2812_v37, %v3727_v4  ;;  %v1296_v13 = vadd.f32 %v3732_v9, %v1295_v36 }
 0x271   : > { %v2765_v49 = vpop.f32.mrf.mxu1  ;;  %v1527_v50 = vpop.f32.mrf.mxu0 }
 0x272   : > { %1867 = vst [vmem:[%s3606_s15 + $0xa8] sm:$0xf] %v2462_v41  ;;  %v2467_v57 = vpack.c.bf16 %v1536_v44, %v1536_v44  ;;  %v1307_v63 = vadd.f32 %v2765_v49, %v3732_v9  ;;  %v1528_v6 = vadd.f32 %v3727_v4, %v1527_v50 }
 0x273   : > { %v1298_v14 = vpop.f32.mrf.mxu1  ;;  %v2813_v19 = vpop.f32.mrf.mxu0 }
 0x274   : > { %1872 = vst [vmem:[%s3606_s15 + $0xd0] sm:$0xf] %v2467_v57  ;;  %v2575_v23 = vpack.c.bf16 %v1307_v63, %v1304_v56  ;;  %v2465_v25 = vpack.c.bf16 %v1528_v6, %v1528_v6  ;;  %v1299_v28 = vadd.f32 %v3732_v9, %v1298_v14  ;;  %v1539_v7 = vadd.f32 %v2813_v19, %v3727_v4 }
 0x275   : > { %v2768_v8 = vpop.f32.mrf.mxu1  ;;  %v1530_v11 = vpop.f32.mrf.mxu0 }
 0x276   : > { %2599 = vst [vmem:[%s3744_s24 + $0x68] sm:$0xff] %v2575_v23   ;;  %1870 = vst [vmem:[%s3606_s15 + $0xc0] sm:$0xf] %v2465_v25  ;;  %v2570_v12 = vpack.c.bf16 %v1299_v28, %v1296_v13  ;;  %v2468_v58 = vpack.c.bf16 %v1539_v7, %v1539_v7  ;;  %v1531_v15 = vadd.f32 %v3727_v4, %v1530_v11 }
 0x277   : > { %v1311_v18 = vpop.f32.mrf.mxu1  ;;  %v2816_v20 = vpop.f32.mrf.mxu0  ;;  %v1320_v32 = vadd.f32 %v2768_v8, %v3732_v9 }
 0x278   : > { %2598 = vst [vmem:[%s3744_s24 + $0x60] sm:$0xff] %v2570_v12   ;;  %1873 = vst [vmem:[%s3606_s15 + $0xd8] sm:$0xf] %v2468_v58  ;;  %v2466_v22 = vpack.c.bf16 %v1531_v15, %v1531_v15  ;;  %v1552_v26 = vadd.f32 %v2816_v20, %v3727_v4  ;;  %v1312_v35 = vadd.f32 %v3732_v9, %v1311_v18 }
 0x279   : > { %v2769_v27 = vpop.f32.mrf.mxu1  ;;  %v1543_v31 = vpop.f32.mrf.mxu0 }
 0x27a   : > { %1871 = vst [vmem:[%s3606_s15 + $0xc8] sm:$0xf] %v2466_v22  ;;  %v2471_v60 = vpack.c.bf16 %v1552_v26, %v1552_v26  ;;  %v1323_v33 = vadd.f32 %v2769_v27, %v3732_v9  ;;  %v1544_v34 = vadd.f32 %v3727_v4, %v1543_v31 }
 0x27b   : > { %v1314_v38 = vpop.f32.mrf.mxu1  ;;  %v2817_v39 = vpop.f32.mrf.mxu0 }
 0x27c   : > { %1876 = vst [vmem:[%s3606_s15 + $0xf0] sm:$0xf] %v2471_v60  ;;  %v2585_v40 = vpack.c.bf16 %v1323_v33, %v1320_v32  ;;  %v2469_v42 = vpack.c.bf16 %v1544_v34, %v1544_v34  ;;  %v1315_v43 = vadd.f32 %v3732_v9, %v1314_v38  ;;  %v1555_v45 = vadd.f32 %v2817_v39, %v3727_v4 }
 0x27d   : > { %v1546_v46 = vpop.f32.mrf.mxu0 }
 0x27e   : > { %2601 = vst [vmem:[%s3744_s24 + $0x78] sm:$0xff] %v2585_v40   ;;  %1874 = vst [vmem:[%s3606_s15 + $0xe0] sm:$0xf] %v2469_v42  ;;  %v2580_v47 = vpack.c.bf16 %v1315_v43, %v1312_v35  ;;  %v2472_v48 = vpack.c.bf16 %v1555_v45, %v1555_v45  ;;  %v1547_v51 = vadd.f32 %v3727_v4, %v1546_v46 }
 0x280   : > { %2600 = vst [vmem:[%s3744_s24 + $0x70] sm:$0xff] %v2580_v47   ;;  %1877 = vst [vmem:[%s3606_s15 + $0xf8] sm:$0xf] %v2472_v48  ;;  %v2470_v9 = vpack.c.bf16 %v1547_v51, %v1547_v51 }
 0x281   : > { %3124 = shalt.err (!%p3121_p9)
}
 0x282   : > { %s3125_s24 = scalar_lea.hbm %s3846_s9, 2048  ;;  %s3129_s21 = scalar_lea.hbm %s3944_s7, 4096 }
 0x283   : > { %p3126_p13 = scmp.ne.s32.totalorder %s3846_s9, %s3125_s24  ;;  %p3130_p5 = scmp.lt.s32.totalorder %s3846_s9, %s3944_s7 }
 0x284   : > { %p3131_p10 = scmp.lt.s32.totalorder %s3129_s21, %s3125_s24 }
 0x285   : > { %p3127_p12 = pnand %p3126_p13, %p3403_p6 }
 0x286   : > { %p3132_p11 = por %p3131_p10, %p3130_p5 }
 0x287   : > { %p3128_p0 = pneg %p3127_p12 }
 0x289   : > { %p3133_p8 = pnand %p3132_p11, %p3128_p0 }
 0x28b   : > { %3136 = shalt.err (!%p3133_p8)
}
 0x28c   : > { %s3241_s5 = smov 64   ;;  %s3242_s17 = smov 4   ;;  %1875 = vst [vmem:[%s3606_s15 + $0xe8] sm:$0xf] %v2470_v9 }
 0x28d   : > { %2848 = dma.vmem_to_hbm [thread:$0]  (%p3403_p6), %s3853_s18, 2048, %s3846_s9, %s2039_s30, %s3241_s5, %s3241_s5, %s3242_s17  }
 0x28e   : > { %s2044_s12 = scalar_lea.sflag [#allocation12], %s3434_s19  ;;  %s3137_s11 = scalar_lea.vmem %s3863_s26, 4096 }
 0x28f   : > { %p3138_p1 = scmp.ne.s32.totalorder %s3863_s26, %s3137_s11  ;;  %s3243_s14 = smov [#allocation11]  }
 0x290   : > { %s3141_s24 = sshll.u32 %s3243_s14, 4  ;;  %s3142_s24 = int_to_ptr.vmem [resolvable:$false] %s3141_s24 }
 0x291   : > { %p3139_p2 = pnand %p3138_p1, %p3403_p6  ;;  %s3143_s20 = scalar_lea.vmem %s3142_s24, 8192 }
 0x292   : > { %p3144_p3 = scmp.lt.s32.totalorder %s3863_s26, %s3142_s24  ;;  %p3145_p7 = scmp.lt.s32.totalorder %s3143_s20, %s3137_s11 }
 0x293   : > { %p3140_p4 = pneg %p3139_p2 }
 0x294   : > { %p3146_p9 = por %p3145_p7, %p3144_p3 }
 0x296   : > { %p3147_p13 = pnand %p3146_p9, %p3140_p4 }
 0x298   : > { %3150 = shalt.err (!%p3147_p13)
}
 0x299   : > { %s3151_s15 = scalar_lea.hbm %s3861_s13, 4096  ;;  %s3155_s30 = scalar_lea.hbm %s3945_s8, 8192 }
 0x29a   : > { %p3152_p12 = scmp.ne.s32.totalorder %s3861_s13, %s3151_s15  ;;  %p3156_p10 = scmp.lt.s32.totalorder %s3861_s13, %s3945_s8 }
 0x29b   : > { %p3157_p11 = scmp.lt.s32.totalorder %s3155_s30, %s3151_s15 }
 0x29c   : > { %p3153_p0 = pnand %p3152_p12, %p3403_p6 }
 0x29d   : > { %p3158_p8 = por %p3157_p11, %p3156_p10 }
 0x29e   : > { %p3154_p5 = pneg %p3153_p0 }
 0x2a0   : > { %p3159_p1 = pnand %p3158_p8, %p3154_p5 }
 0x2a2   : > { %3162 = shalt.err (!%p3159_p1)
}
 0x2a3   : > { %s3244_s25 = smov 128   ;;  %s3245_s1 = smov 8  }
 0x2a4   : > { %2849 = dma.vmem_to_hbm [thread:$0]  (%p3403_p6), %s3863_s26, 4096, %s3861_s13, %s2044_s12, %s3244_s25, %s3244_s25, %s3245_s1  }
 0x2a5 PF: > { %s2093_s5 = sand.u32 1, %s3209_s27   ;;  %p3974_p2 = scmp.ne.s32.totalorder %s3960_s16, 0 }
 0x2a6   : > { %p3975_p4 = scmp.ge.s32.totalorder %s3229_s10, 2  ;;  %s2094_s17 = scalar_lea.sflag [#allocation4], %s2093_s5 }
 0x2a8   : > { %p2867_p3 = pnand %p3975_p4, %p3974_p2 }
 0x2aa   : > { %p2868_p7 = pneg %p2867_p3 }
 0x2ac   : > { %3200 = dma.done.wait (%p2868_p7), %s2094_s17, 2048  }
 0x2ad   : > { %3202 = vsyncadd (%p2868_p7), %s2094_s17, 4294965248  ;;  %s2103_s11 = scalar_lea.sflag [#allocation12], %s2093_s5 }
 0x2ae   : > { %3204 = dma.done.wait (%p2868_p7), %s2103_s11, 4096  }
 0x2af   : > { %3206 = vsyncadd (%p2868_p7), %s2103_s11, 4294963200  ;;  %s30_s10 = sadd.s32 1, %s3229_s10   ;;  %s3976_s30 = sld [smem:[#allocation18_spill]] }
 0x2b0   : > { %p27_p9 = scmp.ge.s32.totalorder %s30_s10, 4   ;;  %s3977_s9 = sld [smem:[#allocation19_spill]] }
 0x2b1   : > { %s3978_s27 = smov %s3213_s28  ;;  %s3979_s28 = smov %s3217_s29 }
 0x2b2   : > { %s3980_s29 = smov %s3412_s22  ;;  %29 = sbr.rel (!%p27_p9) target bundleno = 14 (0xe), region = 122 }
 0x2b7   :  { %2108 = vsyncpa [#allocation3], 1 }
 0x2b8   :  { %2110 = vsyncpa [#allocation3 + $0x1], 1 }
 0x2b9   :  { %2111 = vsyncpa [#allocation6], 1 }
 0x2ba   :  { %2112 = vsyncpa [#allocation9], 1 }
 0x2bb   :  { %2113 = vsyncpa [#allocation4], 1 }
 0x2bc   :  { %2115 = vsyncpa [#allocation4 + $0x1], 1 }
 0x2bd   :  { %2116 = vsyncpa [#allocation12], 1 }
 0x2be   :  { %2118 = vsyncpa [#allocation12 + $0x1], 1 }

</bundles_post_ra>
